<compile_context>
chip_gen: v7x
topology: tpu7x:2x2x1
jax: 0.10.0
libtpu: 0.0.40
codegen_flags: <defaults>
</compile_context>

<pallas_src>
import math
import jax
import jax.numpy as jnp
from jax import lax
from jax.experimental import pallas as pl
from jax.experimental.pallas import tpu as pltpu

# ---------------- small GPT config (synthetic, deterministic init) ----------------
V = 32        # tgt_vocab_size (after resize_token_embeddings)
D = 32        # n_embd
H = 4         # n_head
HD = D // H   # head dim
NLAYER = 2    # n_layer
NPOS = 16     # n_positions
LN_EPS = 1e-5
NEG = -1e4
LM_PAD = 128  # lane-dense logits width (>= V)

_NT = (((1,), (1,)), ((), ()))   # contract last dim of both operands (A @ B^T)


def _vmem():
    return pl.BlockSpec(memory_space=pltpu.MemorySpace.VMEM)


def _layernorm(x, g, b):
    mu = jnp.mean(x, axis=-1, keepdims=True)
    xc = x - mu
    var = jnp.mean(xc * xc, axis=-1, keepdims=True)
    return xc * lax.rsqrt(var + LN_EPS) * g + b


def _gelu(x):
    # GPT-1 tanh-approximate gelu (EUP tanh)
    return 0.5 * x * (1.0 + jnp.tanh(math.sqrt(2.0 / math.pi) * (x + 0.044715 * x * x * x)))


# --------------------------- single fused forward kernel ---------------------------

def fused_forward_kernel(h0_ref, bias_ref, wqkv_ref, bqkv_ref, wo_ref,
                         wfc_ref, bfc_ref, wmp_ref, vecs_ref, wlm_ref,
                         hid_ref, logits_ref):
    bf = jnp.bfloat16
    f32 = jnp.float32
    x = h0_ref[...]                          # [BS, D] f32, stays resident across layers
    BS = x.shape[0]
    bias = bias_ref[...]                     # [H*BS, H*BS] additive bias (block-diag heads)

    for l in range(NLAYER):                  # static unroll: NLAYER=2, fully visible to LLO
        x16 = x.astype(bf)                   # bf16 cast hoisted: once per layer
        vecs = vecs_ref[l]                   # [8, D] f32 slab of small per-layer vectors
        bo, g1, b1 = vecs[0:1], vecs[1:2], vecs[2:3]
        bmp, g2, b2 = vecs[3:4], vecs[4:5], vecs[5:6]

        # ---- fused QKV projection: one [BS,D]x[D,3D] matmul (attn scale pre-folded) ----
        qkv = jnp.dot(x16, wqkv_ref[l], preferred_element_type=f32) + bqkv_ref[l]   # [BS, 3D]

        # ---- stack heads along sublanes -> [H*BS, HD] ----
        qs = jnp.concatenate(
            [qkv[:, 0 * D + h * HD: 0 * D + (h + 1) * HD] for h in range(H)], axis=0)
        ks = jnp.concatenate(
            [qkv[:, 1 * D + h * HD: 1 * D + (h + 1) * HD] for h in range(H)], axis=0)
        vs = jnp.concatenate(
            [qkv[:, 2 * D + h * HD: 2 * D + (h + 1) * HD] for h in range(H)], axis=0)

        # ---- ONE score matmul + ONE softmax + ONE ctx matmul for all heads ----
        s = lax.dot_general(qs.astype(bf), ks.astype(bf), _NT,
                            preferred_element_type=f32) + bias                      # [H*BS, H*BS]
        s = s - jnp.max(s, axis=-1, keepdims=True)
        p = jnp.exp(s)
        p = p * pl.reciprocal(jnp.sum(p, axis=-1, keepdims=True), approx=True)
        ctx = jnp.dot(p.astype(bf), vs.astype(bf), preferred_element_type=f32)      # [H*BS, HD]

        # ---- un-stack heads back into lanes; ONE fused output projection ----
        ctx_l = jnp.concatenate([ctx[h * BS:(h + 1) * BS, :] for h in range(H)], axis=-1)
        att = jnp.dot(ctx_l.astype(bf), wo_ref[l], preferred_element_type=f32) + bo  # [BS, D]

        # ---- residual + ln_1 (post-LN, GPT-1) ----
        n1 = _layernorm(x + att, g1, b1)

        # ---- MLP ----
        m = jnp.dot(n1.astype(bf), wfc_ref[l], preferred_element_type=f32) + bfc_ref[l]
        m = _gelu(m)
        m = jnp.dot(m.astype(bf), wmp_ref[l], preferred_element_type=f32) + bmp

        # ---- residual + ln_2 ----
        x = _layernorm(n1 + m, g2, b2)
        hid_ref[l] = x

    # ---- tied LM head: weight pre-transposed + zero-padded to 128 lanes (unmasked vst) ----
    logits_ref[...] = jnp.dot(x.astype(bf), wlm_ref[...], preferred_element_type=f32)


# ------------------------------ parameter init -------------------------------

def init_params(key):
    keys = jax.random.split(key, 2 + NLAYER)
    params = {
        'wte': 0.02 * jax.random.normal(keys[0], (V, D), jnp.float32),
        'wpe': 0.02 * jax.random.normal(keys[1], (NPOS, D), jnp.float32),
        'layers': [],
    }
    for i in range(NLAYER):
        kk = jax.random.split(keys[2 + i], 4)
        params['layers'].append(dict(
            w_attn=0.02 * jax.random.normal(kk[0], (D, 3 * D), jnp.float32),
            b_attn=jnp.zeros((1, 3 * D), jnp.float32),
            w_aproj=0.02 * jax.random.normal(kk[1], (D, D), jnp.float32),
            b_aproj=jnp.zeros((1, D), jnp.float32),
            g1=jnp.ones((1, D), jnp.float32), b1=jnp.zeros((1, D), jnp.float32),
            w_fc=0.02 * jax.random.normal(kk[2], (D, 4 * D), jnp.float32),
            b_fc=jnp.zeros((1, 4 * D), jnp.float32),
            w_mproj=0.02 * jax.random.normal(kk[3], (4 * D, D), jnp.float32),
            b_mproj=jnp.zeros((1, D), jnp.float32),
            g2=jnp.ones((1, D), jnp.float32), b2=jnp.zeros((1, D), jnp.float32),
        ))
    return params


# ------------------------- trace-time weight re-layout -------------------------

def _pack(params):
    """Stack per-layer weights into a few slabs (trace-time XLA, outside the kernel).
    Attention scale is folded into the Q columns of W_qkv / b_qkv."""
    ls = params['layers']
    bf = jnp.bfloat16
    stack = lambda k: jnp.stack([p[k] for p in ls], axis=0)

    scale = 1.0 / math.sqrt(HD)
    qscale = jnp.concatenate([jnp.full((D,), scale, jnp.float32),
                              jnp.ones((2 * D,), jnp.float32)], axis=0)

    w_attn = stack('w_attn')                                  # [L, D, 3D]
    b_attn = stack('b_attn')                                  # [L, 1, 3D]

    vecs = jnp.stack([jnp.concatenate(
        [p['b_aproj'], p['g1'], p['b1'], p['b_mproj'], p['g2'], p['b2'],
         jnp.zeros((2, D), jnp.float32)], axis=0) for p in ls], axis=0)   # [L, 8, D]

    wlm = jnp.concatenate([params['wte'].T,
                           jnp.zeros((D, LM_PAD - V), jnp.float32)], axis=1)  # [D, 128]

    return dict(
        wqkv=(w_attn * qscale[None, None, :]).astype(bf),     # [L, D, 3D] bf16
        bqkv=b_attn * qscale[None, None, :],                  # [L, 1, 3D] f32
        wo=stack('w_aproj').astype(bf),                       # [L, D, D]  bf16
        wfc=stack('w_fc').astype(bf),                         # [L, D, 4D] bf16
        bfc=stack('b_fc'),                                    # [L, 1, 4D] f32
        wmp=stack('w_mproj').astype(bf),                      # [L, 4D, D] bf16
        vecs=vecs,                                            # [L, 8, D]  f32
        wlm=wlm.astype(bf),                                   # [D, 128]   bf16 (tied head)
    )


def _attn_bias(attention_mask, Bsz, S):
    """Additive bias over head-stacked global positions [H*B*S, H*B*S]:
    causal + pad + cross-batch within a head block, NEG across head blocks."""
    BS = Bsz * S
    if attention_mask is None:
        am = jnp.ones((BS,), jnp.float32)
    else:
        am = attention_mask.astype(jnp.float32).reshape(BS)
    idx = jnp.arange(BS, dtype=jnp.int32)
    b_idx = idx // S
    s_idx = idx % S
    allow = (b_idx[:, None] == b_idx[None, :]) & (s_idx[:, None] >= s_idx[None, :])
    bias = jnp.where(allow, 0.0, NEG) + (1.0 - am)[None, :] * NEG          # [BS, BS]
    hq = jnp.arange(H * BS, dtype=jnp.int32) // BS
    same_head = hq[:, None] == hq[None, :]
    return jnp.where(same_head, jnp.tile(bias, (H, H)), NEG)              # [H*BS, H*BS]


# -------------------------------- forward pass --------------------------------

@jax.jit
def language_model_forward(input_tgt, attention_mask, params):
    """Equivalent of LanguageModel.forward(input_tgt, attention_mask).
    Returns (lm_logits, all_hidden_states) like the HF LM-head model with
    output_hidden_states=True (dropout is identity in eval mode)."""
    if input_tgt.ndim == 3:                      # continuous token distributions
        Bsz, S, _ = input_tgt.shape
        inputs_embeds = jnp.einsum('bsv,vd->bsd',
                                   input_tgt.astype(jnp.float32), params['wte'])
    else:                                        # discrete token ids -> XLA gather
        Bsz, S = input_tgt.shape
        inputs_embeds = jnp.take(params['wte'], input_tgt, axis=0)
    BS = Bsz * S
    h0 = (inputs_embeds + params['wpe'][:S][None, :, :]).reshape(BS, D).astype(jnp.float32)

    bias = _attn_bias(attention_mask, Bsz, S)
    w = _pack(params)

    fused = pl.pallas_call(
        fused_forward_kernel,
        in_specs=[_vmem() for _ in range(10)],
        out_specs=(_vmem(), _vmem()),
        out_shape=(jax.ShapeDtypeStruct((NLAYER, BS, D), jnp.float32),
                   jax.ShapeDtypeStruct((BS, LM_PAD), jnp.float32)),
    )
    hid_all, logits_pad = fused(
        h0, bias,
        w['wqkv'], w['bqkv'], w['wo'],
        w['wfc'], w['bfc'], w['wmp'], w['vecs'], w['wlm'])

    logits = logits_pad[:, :V].reshape(Bsz, S, V)
    all_hidden = (h0.reshape(Bsz, S, D),) + tuple(
        hid_all[i].reshape(Bsz, S, D) for i in range(NLAYER))
    return logits, all_hidden


if __name__ == "__main__":
    key = jax.random.PRNGKey(0)
    kp, ki = jax.random.split(key)
    params = init_params(kp)

    B, S = 2, 8
    input_ids = jax.random.randint(ki, (B, S), 0, V, dtype=jnp.int32)
    attention_mask = jnp.ones((B, S), jnp.float32).at[1, -2:].set(0.0)

    logits, hiddens = language_model_forward(input_ids, attention_mask, params)
    jax.block_until_ready(logits)
    jax.block_until_ready(hiddens)

    assert logits.shape == (B, S, V)
    assert len(hiddens) == NLAYER + 1
    assert all(hs.shape == (B, S, D) for hs in hiddens)
    assert bool(jnp.all(jnp.isfinite(logits)))
    assert all(bool(jnp.all(jnp.isfinite(hs))) for hs in hiddens)
    print("KERNEL_OK")
</pallas_src>

<mosaic_0001>
module attributes {stable_mosaic.version = 11 : i64} {
  func.func @fused_forward_kernel(%arg0: memref<16x32xf32, #tpu.memory_space<vmem>>, %arg1: memref<64x64xf32, #tpu.memory_space<vmem>>, %arg2: memref<2x32x96xbf16, #tpu.memory_space<vmem>>, %arg3: memref<2x1x96xf32, #tpu.memory_space<vmem>>, %arg4: memref<2x32x32xbf16, #tpu.memory_space<vmem>>, %arg5: memref<2x32x128xbf16, #tpu.memory_space<vmem>>, %arg6: memref<2x1x128xf32, #tpu.memory_space<vmem>>, %arg7: memref<2x128x32xbf16, #tpu.memory_space<vmem>>, %arg8: memref<2x8x32xf32, #tpu.memory_space<vmem>>, %arg9: memref<32x128xbf16, #tpu.memory_space<vmem>>, %arg10: memref<2x16x32xf32, #tpu.memory_space<vmem>>, %arg11: memref<16x128xf32, #tpu.memory_space<vmem>>) attributes {dimension_semantics = [], scalar_prefetch = 0 : i64, scratch_operands = 0 : i64, tpu.core_type = #tpu.core_type<tc>} {
    %c0 = arith.constant 0 : index
    %c0_0 = arith.constant 0 : index
    %0 = vector.load %arg0[%c0, %c0_0] : memref<16x32xf32, #tpu.memory_space<vmem>>, vector<16x32xf32>
    %c0_1 = arith.constant 0 : index
    %c0_2 = arith.constant 0 : index
    %1 = vector.load %arg1[%c0_1, %c0_2] : memref<64x64xf32, #tpu.memory_space<vmem>>, vector<64x64xf32>
    %2 = arith.truncf %0 : vector<16x32xf32> to vector<16x32xbf16>
    %c0_3 = arith.constant 0 : index
    %c0_4 = arith.constant 0 : index
    %c0_5 = arith.constant 0 : index
    %3 = vector.load %arg8[%c0_3, %c0_4, %c0_5] : memref<2x8x32xf32, #tpu.memory_space<vmem>>, vector<1x8x32xf32>
    %4 = vector.shape_cast %3 : vector<1x8x32xf32> to vector<8x32xf32>
    %5 = vector.extract_strided_slice %4 {offsets = [0, 0], sizes = [1, 32], strides = [1, 1]} : vector<8x32xf32> to vector<1x32xf32>
    %6 = vector.extract_strided_slice %4 {offsets = [1, 0], sizes = [1, 32], strides = [1, 1]} : vector<8x32xf32> to vector<1x32xf32>
    %7 = vector.extract_strided_slice %4 {offsets = [2, 0], sizes = [1, 32], strides = [1, 1]} : vector<8x32xf32> to vector<1x32xf32>
    %8 = vector.extract_strided_slice %4 {offsets = [3, 0], sizes = [1, 32], strides = [1, 1]} : vector<8x32xf32> to vector<1x32xf32>
    %9 = vector.extract_strided_slice %4 {offsets = [4, 0], sizes = [1, 32], strides = [1, 1]} : vector<8x32xf32> to vector<1x32xf32>
    %10 = vector.extract_strided_slice %4 {offsets = [5, 0], sizes = [1, 32], strides = [1, 1]} : vector<8x32xf32> to vector<1x32xf32>
    %c0_6 = arith.constant 0 : index
    %c0_7 = arith.constant 0 : index
    %c0_8 = arith.constant 0 : index
    %11 = vector.load %arg2[%c0_6, %c0_7, %c0_8] : memref<2x32x96xbf16, #tpu.memory_space<vmem>>, vector<1x32x96xbf16>
    %12 = vector.shape_cast %11 : vector<1x32x96xbf16> to vector<32x96xbf16>
    %cst = arith.constant dense<0.000000e+00> : vector<16x96xf32>
    %13 = tpu.matmul %2, %12, %cst {dimension_numbers = #tpu.dot_dimension_numbers<[1], [0], [0], [1], [0, 0, 1, 1], [], []>} : vector<16x32xbf16>, vector<32x96xbf16>, vector<16x96xf32> -> vector<16x96xf32>
    %c0_9 = arith.constant 0 : index
    %c0_10 = arith.constant 0 : index
    %c0_11 = arith.constant 0 : index
    %14 = vector.load %arg3[%c0_9, %c0_10, %c0_11] : memref<2x1x96xf32, #tpu.memory_space<vmem>>, vector<1x1x96xf32>
    %15 = vector.shape_cast %14 : vector<1x1x96xf32> to vector<1x96xf32>
    %16 = vector.broadcast %15 : vector<1x96xf32> to vector<16x96xf32>
    %17 = arith.addf %13, %16 : vector<16x96xf32>
    %18 = vector.extract_strided_slice %17 {offsets = [0, 0], sizes = [16, 8], strides = [1, 1]} : vector<16x96xf32> to vector<16x8xf32>
    %19 = vector.extract_strided_slice %17 {offsets = [0, 8], sizes = [16, 8], strides = [1, 1]} : vector<16x96xf32> to vector<16x8xf32>
    %20 = vector.extract_strided_slice %17 {offsets = [0, 16], sizes = [16, 8], strides = [1, 1]} : vector<16x96xf32> to vector<16x8xf32>
    %21 = vector.extract_strided_slice %17 {offsets = [0, 24], sizes = [16, 8], strides = [1, 1]} : vector<16x96xf32> to vector<16x8xf32>
    %22 = tpu.concatenate %18, %19, %20, %21 in 0 : vector<16x8xf32>, vector<16x8xf32>, vector<16x8xf32>, vector<16x8xf32> -> vector<64x8xf32>
    %23 = vector.extract_strided_slice %17 {offsets = [0, 32], sizes = [16, 8], strides = [1, 1]} : vector<16x96xf32> to vector<16x8xf32>
    %24 = vector.extract_strided_slice %17 {offsets = [0, 40], sizes = [16, 8], strides = [1, 1]} : vector<16x96xf32> to vector<16x8xf32>
    %25 = vector.extract_strided_slice %17 {offsets = [0, 48], sizes = [16, 8], strides = [1, 1]} : vector<16x96xf32> to vector<16x8xf32>
    %26 = vector.extract_strided_slice %17 {offsets = [0, 56], sizes = [16, 8], strides = [1, 1]} : vector<16x96xf32> to vector<16x8xf32>
    %27 = tpu.concatenate %23, %24, %25, %26 in 0 : vector<16x8xf32>, vector<16x8xf32>, vector<16x8xf32>, vector<16x8xf32> -> vector<64x8xf32>
    %28 = vector.extract_strided_slice %17 {offsets = [0, 64], sizes = [16, 8], strides = [1, 1]} : vector<16x96xf32> to vector<16x8xf32>
    %29 = vector.extract_strided_slice %17 {offsets = [0, 72], sizes = [16, 8], strides = [1, 1]} : vector<16x96xf32> to vector<16x8xf32>
    %30 = vector.extract_strided_slice %17 {offsets = [0, 80], sizes = [16, 8], strides = [1, 1]} : vector<16x96xf32> to vector<16x8xf32>
    %31 = vector.extract_strided_slice %17 {offsets = [0, 88], sizes = [16, 8], strides = [1, 1]} : vector<16x96xf32> to vector<16x8xf32>
    %32 = tpu.concatenate %28, %29, %30, %31 in 0 : vector<16x8xf32>, vector<16x8xf32>, vector<16x8xf32>, vector<16x8xf32> -> vector<64x8xf32>
    %33 = arith.truncf %22 : vector<64x8xf32> to vector<64x8xbf16>
    %34 = arith.truncf %27 : vector<64x8xf32> to vector<64x8xbf16>
    %cst_12 = arith.constant dense<0.000000e+00> : vector<64x64xf32>
    %35 = tpu.matmul %33, %34, %cst_12 {dimension_numbers = #tpu.dot_dimension_numbers<[1], [1], [0], [0], [0, 0, 1, 0], [], []>} : vector<64x8xbf16>, vector<64x8xbf16>, vector<64x64xf32> -> vector<64x64xf32>
    %36 = arith.addf %35, %1 : vector<64x64xf32>
    %cst_13 = arith.constant dense<0xFF800000> : vector<64xf32>
    %37 = vector.multi_reduction <maximumf>, %36, %cst_13 [1] : vector<64x64xf32> to vector<64xf32>
    %38 = vector.shape_cast %37 : vector<64xf32> to vector<64x1xf32>
    %39 = vector.broadcast %38 : vector<64x1xf32> to vector<64x64xf32>
    %40 = arith.subf %36, %39 : vector<64x64xf32>
    %41 = math.exp %40 : vector<64x64xf32>
    %cst_14 = arith.constant dense<0.000000e+00> : vector<64xf32>
    %42 = vector.multi_reduction <add>, %41, %cst_14 [1] : vector<64x64xf32> to vector<64xf32>
    %43 = vector.shape_cast %42 : vector<64xf32> to vector<64x1xf32>
    %44 = tpu.reciprocal %43 {approx = true} : vector<64x1xf32> -> vector<64x1xf32>
    %45 = vector.broadcast %44 : vector<64x1xf32> to vector<64x64xf32>
    %46 = arith.mulf %41, %45 : vector<64x64xf32>
    %47 = arith.truncf %46 : vector<64x64xf32> to vector<64x64xbf16>
    %48 = arith.truncf %32 : vector<64x8xf32> to vector<64x8xbf16>
    %cst_15 = arith.constant dense<0.000000e+00> : vector<64x8xf32>
    %49 = tpu.matmul %47, %48, %cst_15 {dimension_numbers = #tpu.dot_dimension_numbers<[1], [0], [0], [1], [0, 0, 1, 1], [], []>} : vector<64x64xbf16>, vector<64x8xbf16>, vector<64x8xf32> -> vector<64x8xf32>
    %50 = vector.extract_strided_slice %49 {offsets = [0, 0], sizes = [16, 8], strides = [1, 1]} : vector<64x8xf32> to vector<16x8xf32>
    %51 = vector.extract_strided_slice %49 {offsets = [16, 0], sizes = [16, 8], strides = [1, 1]} : vector<64x8xf32> to vector<16x8xf32>
    %52 = vector.extract_strided_slice %49 {offsets = [32, 0], sizes = [16, 8], strides = [1, 1]} : vector<64x8xf32> to vector<16x8xf32>
    %53 = vector.extract_strided_slice %49 {offsets = [48, 0], sizes = [16, 8], strides = [1, 1]} : vector<64x8xf32> to vector<16x8xf32>
    %54 = tpu.concatenate %50, %51, %52, %53 in 1 : vector<16x8xf32>, vector<16x8xf32>, vector<16x8xf32>, vector<16x8xf32> -> vector<16x32xf32>
    %55 = arith.truncf %54 : vector<16x32xf32> to vector<16x32xbf16>
    %c0_16 = arith.constant 0 : index
    %c0_17 = arith.constant 0 : index
    %c0_18 = arith.constant 0 : index
    %56 = vector.load %arg4[%c0_16, %c0_17, %c0_18] : memref<2x32x32xbf16, #tpu.memory_space<vmem>>, vector<1x32x32xbf16>
    %57 = vector.shape_cast %56 : vector<1x32x32xbf16> to vector<32x32xbf16>
    %cst_19 = arith.constant dense<0.000000e+00> : vector<16x32xf32>
    %58 = tpu.matmul %55, %57, %cst_19 {dimension_numbers = #tpu.dot_dimension_numbers<[1], [0], [0], [1], [0, 0, 1, 1], [], []>} : vector<16x32xbf16>, vector<32x32xbf16>, vector<16x32xf32> -> vector<16x32xf32>
    %59 = vector.broadcast %5 : vector<1x32xf32> to vector<16x32xf32>
    %60 = arith.addf %58, %59 : vector<16x32xf32>
    %61 = arith.addf %0, %60 : vector<16x32xf32>
    %cst_20 = arith.constant dense<0.000000e+00> : vector<16xf32>
    %62 = vector.multi_reduction <add>, %61, %cst_20 [1] : vector<16x32xf32> to vector<16xf32>
    %63 = vector.shape_cast %62 : vector<16xf32> to vector<16x1xf32>
    %cst_21 = arith.constant 3.200000e+01 : f32
    %64 = vector.broadcast %cst_21 : f32 to vector<16x1xf32>
    %65 = arith.divf %63, %64 : vector<16x1xf32>
    %66 = vector.broadcast %65 : vector<16x1xf32> to vector<16x32xf32>
    %67 = arith.subf %61, %66 : vector<16x32xf32>
    %68 = arith.mulf %67, %67 : vector<16x32xf32>
    %cst_22 = arith.constant dense<0.000000e+00> : vector<16xf32>
    %69 = vector.multi_reduction <add>, %68, %cst_22 [1] : vector<16x32xf32> to vector<16xf32>
    %70 = vector.shape_cast %69 : vector<16xf32> to vector<16x1xf32>
    %cst_23 = arith.constant 3.200000e+01 : f32
    %71 = vector.broadcast %cst_23 : f32 to vector<16x1xf32>
    %72 = arith.divf %70, %71 : vector<16x1xf32>
    %cst_24 = arith.constant 9.99999974E-6 : f32
    %73 = vector.broadcast %cst_24 : f32 to vector<16x1xf32>
    %74 = arith.addf %72, %73 : vector<16x1xf32>
    %75 = math.rsqrt %74 : vector<16x1xf32>
    %76 = vector.broadcast %75 : vector<16x1xf32> to vector<16x32xf32>
    %77 = arith.mulf %67, %76 : vector<16x32xf32>
    %78 = vector.broadcast %6 : vector<1x32xf32> to vector<16x32xf32>
    %79 = arith.mulf %77, %78 : vector<16x32xf32>
    %80 = vector.broadcast %7 : vector<1x32xf32> to vector<16x32xf32>
    %81 = arith.addf %79, %80 : vector<16x32xf32>
    %82 = arith.truncf %81 : vector<16x32xf32> to vector<16x32xbf16>
    %c0_25 = arith.constant 0 : index
    %c0_26 = arith.constant 0 : index
    %c0_27 = arith.constant 0 : index
    %83 = vector.load %arg5[%c0_25, %c0_26, %c0_27] : memref<2x32x128xbf16, #tpu.memory_space<vmem>>, vector<1x32x128xbf16>
    %84 = vector.shape_cast %83 : vector<1x32x128xbf16> to vector<32x128xbf16>
    %cst_28 = arith.constant dense<0.000000e+00> : vector<16x128xf32>
    %85 = tpu.matmul %82, %84, %cst_28 {dimension_numbers = #tpu.dot_dimension_numbers<[1], [0], [0], [1], [0, 0, 1, 1], [], []>} : vector<16x32xbf16>, vector<32x128xbf16>, vector<16x128xf32> -> vector<16x128xf32>
    %c0_29 = arith.constant 0 : index
    %c0_30 = arith.constant 0 : index
    %c0_31 = arith.constant 0 : index
    %86 = vector.load %arg6[%c0_29, %c0_30, %c0_31] : memref<2x1x128xf32, #tpu.memory_space<vmem>>, vector<1x1x128xf32>
    %87 = vector.shape_cast %86 : vector<1x1x128xf32> to vector<1x128xf32>
    %88 = vector.broadcast %87 : vector<1x128xf32> to vector<16x128xf32>
    %89 = arith.addf %85, %88 : vector<16x128xf32>
    %cst_32 = arith.constant 5.000000e-01 : f32
    %90 = vector.broadcast %cst_32 : f32 to vector<16x128xf32>
    %91 = arith.mulf %90, %89 : vector<16x128xf32>
    %cst_33 = arith.constant 4.471500e-02 : f32
    %92 = vector.broadcast %cst_33 : f32 to vector<16x128xf32>
    %93 = arith.mulf %92, %89 : vector<16x128xf32>
    %94 = arith.mulf %93, %89 : vector<16x128xf32>
    %95 = arith.mulf %94, %89 : vector<16x128xf32>
    %96 = arith.addf %89, %95 : vector<16x128xf32>
    %cst_34 = arith.constant 0.797884583 : f32
    %97 = vector.broadcast %cst_34 : f32 to vector<16x128xf32>
    %98 = arith.mulf %97, %96 : vector<16x128xf32>
    %99 = math.tanh %98 : vector<16x128xf32>
    %cst_35 = arith.constant 1.000000e+00 : f32
    %100 = vector.broadcast %cst_35 : f32 to vector<16x128xf32>
    %101 = arith.addf %100, %99 : vector<16x128xf32>
    %102 = arith.mulf %91, %101 : vector<16x128xf32>
    %103 = arith.truncf %102 : vector<16x128xf32> to vector<16x128xbf16>
    %c0_36 = arith.constant 0 : index
    %c0_37 = arith.constant 0 : index
    %c0_38 = arith.constant 0 : index
    %104 = vector.load %arg7[%c0_36, %c0_37, %c0_38] : memref<2x128x32xbf16, #tpu.memory_space<vmem>>, vector<1x128x32xbf16>
    %105 = vector.shape_cast %104 : vector<1x128x32xbf16> to vector<128x32xbf16>
    %cst_39 = arith.constant dense<0.000000e+00> : vector<16x32xf32>
    %106 = tpu.matmul %103, %105, %cst_39 {dimension_numbers = #tpu.dot_dimension_numbers<[1], [0], [0], [1], [0, 0, 1, 1], [], []>} : vector<16x128xbf16>, vector<128x32xbf16>, vector<16x32xf32> -> vector<16x32xf32>
    %107 = vector.broadcast %8 : vector<1x32xf32> to vector<16x32xf32>
    %108 = arith.addf %106, %107 : vector<16x32xf32>
    %109 = arith.addf %81, %108 : vector<16x32xf32>
    %cst_40 = arith.constant dense<0.000000e+00> : vector<16xf32>
    %110 = vector.multi_reduction <add>, %109, %cst_40 [1] : vector<16x32xf32> to vector<16xf32>
    %111 = vector.shape_cast %110 : vector<16xf32> to vector<16x1xf32>
    %cst_41 = arith.constant 3.200000e+01 : f32
    %112 = vector.broadcast %cst_41 : f32 to vector<16x1xf32>
    %113 = arith.divf %111, %112 : vector<16x1xf32>
    %114 = vector.broadcast %113 : vector<16x1xf32> to vector<16x32xf32>
    %115 = arith.subf %109, %114 : vector<16x32xf32>
    %116 = arith.mulf %115, %115 : vector<16x32xf32>
    %cst_42 = arith.constant dense<0.000000e+00> : vector<16xf32>
    %117 = vector.multi_reduction <add>, %116, %cst_42 [1] : vector<16x32xf32> to vector<16xf32>
    %118 = vector.shape_cast %117 : vector<16xf32> to vector<16x1xf32>
    %cst_43 = arith.constant 3.200000e+01 : f32
    %119 = vector.broadcast %cst_43 : f32 to vector<16x1xf32>
    %120 = arith.divf %118, %119 : vector<16x1xf32>
    %cst_44 = arith.constant 9.99999974E-6 : f32
    %121 = vector.broadcast %cst_44 : f32 to vector<16x1xf32>
    %122 = arith.addf %120, %121 : vector<16x1xf32>
    %123 = math.rsqrt %122 : vector<16x1xf32>
    %124 = vector.broadcast %123 : vector<16x1xf32> to vector<16x32xf32>
    %125 = arith.mulf %115, %124 : vector<16x32xf32>
    %126 = vector.broadcast %9 : vector<1x32xf32> to vector<16x32xf32>
    %127 = arith.mulf %125, %126 : vector<16x32xf32>
    %128 = vector.broadcast %10 : vector<1x32xf32> to vector<16x32xf32>
    %129 = arith.addf %127, %128 : vector<16x32xf32>
    %c0_45 = arith.constant 0 : index
    %c0_46 = arith.constant 0 : index
    %c0_47 = arith.constant 0 : index
    %130 = vector.load %arg10[%c0_45, %c0_46, %c0_47] : memref<2x16x32xf32, #tpu.memory_space<vmem>>, vector<1x16x32xf32>
    %131 = vector.shape_cast %130 : vector<1x16x32xf32> to vector<16x32xf32>
    %132 = vector.shape_cast %129 : vector<16x32xf32> to vector<1x16x32xf32>
    tpu.vector_store %arg10[%c0_45, %c0_46, %c0_47], %132 {strides = array<i32>} : memref<2x16x32xf32, #tpu.memory_space<vmem>>, vector<1x16x32xf32>,
    %133 = arith.truncf %129 : vector<16x32xf32> to vector<16x32xbf16>
    %c1 = arith.constant 1 : index
    %c0_48 = arith.constant 0 : index
    %c0_49 = arith.constant 0 : index
    %134 = vector.load %arg8[%c1, %c0_48, %c0_49] : memref<2x8x32xf32, #tpu.memory_space<vmem>>, vector<1x8x32xf32>
    %135 = vector.shape_cast %134 : vector<1x8x32xf32> to vector<8x32xf32>
    %136 = vector.extract_strided_slice %135 {offsets = [0, 0], sizes = [1, 32], strides = [1, 1]} : vector<8x32xf32> to vector<1x32xf32>
    %137 = vector.extract_strided_slice %135 {offsets = [1, 0], sizes = [1, 32], strides = [1, 1]} : vector<8x32xf32> to vector<1x32xf32>
    %138 = vector.extract_strided_slice %135 {offsets = [2, 0], sizes = [1, 32], strides = [1, 1]} : vector<8x32xf32> to vector<1x32xf32>
    %139 = vector.extract_strided_slice %135 {offsets = [3, 0], sizes = [1, 32], strides = [1, 1]} : vector<8x32xf32> to vector<1x32xf32>
    %140 = vector.extract_strided_slice %135 {offsets = [4, 0], sizes = [1, 32], strides = [1, 1]} : vector<8x32xf32> to vector<1x32xf32>
    %141 = vector.extract_strided_slice %135 {offsets = [5, 0], sizes = [1, 32], strides = [1, 1]} : vector<8x32xf32> to vector<1x32xf32>
    %c1_50 = arith.constant 1 : index
    %c0_51 = arith.constant 0 : index
    %c0_52 = arith.constant 0 : index
    %142 = vector.load %arg2[%c1_50, %c0_51, %c0_52] : memref<2x32x96xbf16, #tpu.memory_space<vmem>>, vector<1x32x96xbf16>
    %143 = vector.shape_cast %142 : vector<1x32x96xbf16> to vector<32x96xbf16>
    %cst_53 = arith.constant dense<0.000000e+00> : vector<16x96xf32>
    %144 = tpu.matmul %133, %143, %cst_53 {dimension_numbers = #tpu.dot_dimension_numbers<[1], [0], [0], [1], [0, 0, 1, 1], [], []>} : vector<16x32xbf16>, vector<32x96xbf16>, vector<16x96xf32> -> vector<16x96xf32>
    %c1_54 = arith.constant 1 : index
    %c0_55 = arith.constant 0 : index
    %c0_56 = arith.constant 0 : index
    %145 = vector.load %arg3[%c1_54, %c0_55, %c0_56] : memref<2x1x96xf32, #tpu.memory_space<vmem>>, vector<1x1x96xf32>
    %146 = vector.shape_cast %145 : vector<1x1x96xf32> to vector<1x96xf32>
    %147 = vector.broadcast %146 : vector<1x96xf32> to vector<16x96xf32>
    %148 = arith.addf %144, %147 : vector<16x96xf32>
    %149 = vector.extract_strided_slice %148 {offsets = [0, 0], sizes = [16, 8], strides = [1, 1]} : vector<16x96xf32> to vector<16x8xf32>
    %150 = vector.extract_strided_slice %148 {offsets = [0, 8], sizes = [16, 8], strides = [1, 1]} : vector<16x96xf32> to vector<16x8xf32>
    %151 = vector.extract_strided_slice %148 {offsets = [0, 16], sizes = [16, 8], strides = [1, 1]} : vector<16x96xf32> to vector<16x8xf32>
    %152 = vector.extract_strided_slice %148 {offsets = [0, 24], sizes = [16, 8], strides = [1, 1]} : vector<16x96xf32> to vector<16x8xf32>
    %153 = tpu.concatenate %149, %150, %151, %152 in 0 : vector<16x8xf32>, vector<16x8xf32>, vector<16x8xf32>, vector<16x8xf32> -> vector<64x8xf32>
    %154 = vector.extract_strided_slice %148 {offsets = [0, 32], sizes = [16, 8], strides = [1, 1]} : vector<16x96xf32> to vector<16x8xf32>
    %155 = vector.extract_strided_slice %148 {offsets = [0, 40], sizes = [16, 8], strides = [1, 1]} : vector<16x96xf32> to vector<16x8xf32>
    %156 = vector.extract_strided_slice %148 {offsets = [0, 48], sizes = [16, 8], strides = [1, 1]} : vector<16x96xf32> to vector<16x8xf32>
    %157 = vector.extract_strided_slice %148 {offsets = [0, 56], sizes = [16, 8], strides = [1, 1]} : vector<16x96xf32> to vector<16x8xf32>
    %158 = tpu.concatenate %154, %155, %156, %157 in 0 : vector<16x8xf32>, vector<16x8xf32>, vector<16x8xf32>, vector<16x8xf32> -> vector<64x8xf32>
    %159 = vector.extract_strided_slice %148 {offsets = [0, 64], sizes = [16, 8], strides = [1, 1]} : vector<16x96xf32> to vector<16x8xf32>
    %160 = vector.extract_strided_slice %148 {offsets = [0, 72], sizes = [16, 8], strides = [1, 1]} : vector<16x96xf32> to vector<16x8xf32>
    %161 = vector.extract_strided_slice %148 {offsets = [0, 80], sizes = [16, 8], strides = [1, 1]} : vector<16x96xf32> to vector<16x8xf32>
    %162 = vector.extract_strided_slice %148 {offsets = [0, 88], sizes = [16, 8], strides = [1, 1]} : vector<16x96xf32> to vector<16x8xf32>
    %163 = tpu.concatenate %159, %160, %161, %162 in 0 : vector<16x8xf32>, vector<16x8xf32>, vector<16x8xf32>, vector<16x8xf32> -> vector<64x8xf32>
    %164 = arith.truncf %153 : vector<64x8xf32> to vector<64x8xbf16>
    %165 = arith.truncf %158 : vector<64x8xf32> to vector<64x8xbf16>
    %cst_57 = arith.constant dense<0.000000e+00> : vector<64x64xf32>
    %166 = tpu.matmul %164, %165, %cst_57 {dimension_numbers = #tpu.dot_dimension_numbers<[1], [1], [0], [0], [0, 0, 1, 0], [], []>} : vector<64x8xbf16>, vector<64x8xbf16>, vector<64x64xf32> -> vector<64x64xf32>
    %167 = arith.addf %166, %1 : vector<64x64xf32>
    %cst_58 = arith.constant dense<0xFF800000> : vector<64xf32>
    %168 = vector.multi_reduction <maximumf>, %167, %cst_58 [1] : vector<64x64xf32> to vector<64xf32>
    %169 = vector.shape_cast %168 : vector<64xf32> to vector<64x1xf32>
    %170 = vector.broadcast %169 : vector<64x1xf32> to vector<64x64xf32>
    %171 = arith.subf %167, %170 : vector<64x64xf32>
    %172 = math.exp %171 : vector<64x64xf32>
    %cst_59 = arith.constant dense<0.000000e+00> : vector<64xf32>
    %173 = vector.multi_reduction <add>, %172, %cst_59 [1] : vector<64x64xf32> to vector<64xf32>
    %174 = vector.shape_cast %173 : vector<64xf32> to vector<64x1xf32>
    %175 = tpu.reciprocal %174 {approx = true} : vector<64x1xf32> -> vector<64x1xf32>
    %176 = vector.broadcast %175 : vector<64x1xf32> to vector<64x64xf32>
    %177 = arith.mulf %172, %176 : vector<64x64xf32>
    %178 = arith.truncf %177 : vector<64x64xf32> to vector<64x64xbf16>
    %179 = arith.truncf %163 : vector<64x8xf32> to vector<64x8xbf16>
    %cst_60 = arith.constant dense<0.000000e+00> : vector<64x8xf32>
    %180 = tpu.matmul %178, %179, %cst_60 {dimension_numbers = #tpu.dot_dimension_numbers<[1], [0], [0], [1], [0, 0, 1, 1], [], []>} : vector<64x64xbf16>, vector<64x8xbf16>, vector<64x8xf32> -> vector<64x8xf32>
    %181 = vector.extract_strided_slice %180 {offsets = [0, 0], sizes = [16, 8], strides = [1, 1]} : vector<64x8xf32> to vector<16x8xf32>
    %182 = vector.extract_strided_slice %180 {offsets = [16, 0], sizes = [16, 8], strides = [1, 1]} : vector<64x8xf32> to vector<16x8xf32>
    %183 = vector.extract_strided_slice %180 {offsets = [32, 0], sizes = [16, 8], strides = [1, 1]} : vector<64x8xf32> to vector<16x8xf32>
    %184 = vector.extract_strided_slice %180 {offsets = [48, 0], sizes = [16, 8], strides = [1, 1]} : vector<64x8xf32> to vector<16x8xf32>
    %185 = tpu.concatenate %181, %182, %183, %184 in 1 : vector<16x8xf32>, vector<16x8xf32>, vector<16x8xf32>, vector<16x8xf32> -> vector<16x32xf32>
    %186 = arith.truncf %185 : vector<16x32xf32> to vector<16x32xbf16>
    %c1_61 = arith.constant 1 : index
    %c0_62 = arith.constant 0 : index
    %c0_63 = arith.constant 0 : index
    %187 = vector.load %arg4[%c1_61, %c0_62, %c0_63] : memref<2x32x32xbf16, #tpu.memory_space<vmem>>, vector<1x32x32xbf16>
    %188 = vector.shape_cast %187 : vector<1x32x32xbf16> to vector<32x32xbf16>
    %cst_64 = arith.constant dense<0.000000e+00> : vector<16x32xf32>
    %189 = tpu.matmul %186, %188, %cst_64 {dimension_numbers = #tpu.dot_dimension_numbers<[1], [0], [0], [1], [0, 0, 1, 1], [], []>} : vector<16x32xbf16>, vector<32x32xbf16>, vector<16x32xf32> -> vector<16x32xf32>
    %190 = vector.broadcast %136 : vector<1x32xf32> to vector<16x32xf32>
    %191 = arith.addf %189, %190 : vector<16x32xf32>
    %192 = arith.addf %129, %191 : vector<16x32xf32>
    %cst_65 = arith.constant dense<0.000000e+00> : vector<16xf32>
    %193 = vector.multi_reduction <add>, %192, %cst_65 [1] : vector<16x32xf32> to vector<16xf32>
    %194 = vector.shape_cast %193 : vector<16xf32> to vector<16x1xf32>
    %cst_66 = arith.constant 3.200000e+01 : f32
    %195 = vector.broadcast %cst_66 : f32 to vector<16x1xf32>
    %196 = arith.divf %194, %195 : vector<16x1xf32>
    %197 = vector.broadcast %196 : vector<16x1xf32> to vector<16x32xf32>
    %198 = arith.subf %192, %197 : vector<16x32xf32>
    %199 = arith.mulf %198, %198 : vector<16x32xf32>
    %cst_67 = arith.constant dense<0.000000e+00> : vector<16xf32>
    %200 = vector.multi_reduction <add>, %199, %cst_67 [1] : vector<16x32xf32> to vector<16xf32>
    %201 = vector.shape_cast %200 : vector<16xf32> to vector<16x1xf32>
    %cst_68 = arith.constant 3.200000e+01 : f32
    %202 = vector.broadcast %cst_68 : f32 to vector<16x1xf32>
    %203 = arith.divf %201, %202 : vector<16x1xf32>
    %cst_69 = arith.constant 9.99999974E-6 : f32
    %204 = vector.broadcast %cst_69 : f32 to vector<16x1xf32>
    %205 = arith.addf %203, %204 : vector<16x1xf32>
    %206 = math.rsqrt %205 : vector<16x1xf32>
    %207 = vector.broadcast %206 : vector<16x1xf32> to vector<16x32xf32>
    %208 = arith.mulf %198, %207 : vector<16x32xf32>
    %209 = vector.broadcast %137 : vector<1x32xf32> to vector<16x32xf32>
    %210 = arith.mulf %208, %209 : vector<16x32xf32>
    %211 = vector.broadcast %138 : vector<1x32xf32> to vector<16x32xf32>
    %212 = arith.addf %210, %211 : vector<16x32xf32>
    %213 = arith.truncf %212 : vector<16x32xf32> to vector<16x32xbf16>
    %c1_70 = arith.constant 1 : index
    %c0_71 = arith.constant 0 : index
    %c0_72 = arith.constant 0 : index
    %214 = vector.load %arg5[%c1_70, %c0_71, %c0_72] : memref<2x32x128xbf16, #tpu.memory_space<vmem>>, vector<1x32x128xbf16>
    %215 = vector.shape_cast %214 : vector<1x32x128xbf16> to vector<32x128xbf16>
    %cst_73 = arith.constant dense<0.000000e+00> : vector<16x128xf32>
    %216 = tpu.matmul %213, %215, %cst_73 {dimension_numbers = #tpu.dot_dimension_numbers<[1], [0], [0], [1], [0, 0, 1, 1], [], []>} : vector<16x32xbf16>, vector<32x128xbf16>, vector<16x128xf32> -> vector<16x128xf32>
    %c1_74 = arith.constant 1 : index
    %c0_75 = arith.constant 0 : index
    %c0_76 = arith.constant 0 : index
    %217 = vector.load %arg6[%c1_74, %c0_75, %c0_76] : memref<2x1x128xf32, #tpu.memory_space<vmem>>, vector<1x1x128xf32>
    %218 = vector.shape_cast %217 : vector<1x1x128xf32> to vector<1x128xf32>
    %219 = vector.broadcast %218 : vector<1x128xf32> to vector<16x128xf32>
    %220 = arith.addf %216, %219 : vector<16x128xf32>
    %cst_77 = arith.constant 5.000000e-01 : f32
    %221 = vector.broadcast %cst_77 : f32 to vector<16x128xf32>
    %222 = arith.mulf %221, %220 : vector<16x128xf32>
    %cst_78 = arith.constant 4.471500e-02 : f32
    %223 = vector.broadcast %cst_78 : f32 to vector<16x128xf32>
    %224 = arith.mulf %223, %220 : vector<16x128xf32>
    %225 = arith.mulf %224, %220 : vector<16x128xf32>
    %226 = arith.mulf %225, %220 : vector<16x128xf32>
    %227 = arith.addf %220, %226 : vector<16x128xf32>
    %cst_79 = arith.constant 0.797884583 : f32
    %228 = vector.broadcast %cst_79 : f32 to vector<16x128xf32>
    %229 = arith.mulf %228, %227 : vector<16x128xf32>
    %230 = math.tanh %229 : vector<16x128xf32>
    %cst_80 = arith.constant 1.000000e+00 : f32
    %231 = vector.broadcast %cst_80 : f32 to vector<16x128xf32>
    %232 = arith.addf %231, %230 : vector<16x128xf32>
    %233 = arith.mulf %222, %232 : vector<16x128xf32>
    %234 = arith.truncf %233 : vector<16x128xf32> to vector<16x128xbf16>
    %c1_81 = arith.constant 1 : index
    %c0_82 = arith.constant 0 : index
    %c0_83 = arith.constant 0 : index
    %235 = vector.load %arg7[%c1_81, %c0_82, %c0_83] : memref<2x128x32xbf16, #tpu.memory_space<vmem>>, vector<1x128x32xbf16>
    %236 = vector.shape_cast %235 : vector<1x128x32xbf16> to vector<128x32xbf16>
    %cst_84 = arith.constant dense<0.000000e+00> : vector<16x32xf32>
    %237 = tpu.matmul %234, %236, %cst_84 {dimension_numbers = #tpu.dot_dimension_numbers<[1], [0], [0], [1], [0, 0, 1, 1], [], []>} : vector<16x128xbf16>, vector<128x32xbf16>, vector<16x32xf32> -> vector<16x32xf32>
    %238 = vector.broadcast %139 : vector<1x32xf32> to vector<16x32xf32>
    %239 = arith.addf %237, %238 : vector<16x32xf32>
    %240 = arith.addf %212, %239 : vector<16x32xf32>
    %cst_85 = arith.constant dense<0.000000e+00> : vector<16xf32>
    %241 = vector.multi_reduction <add>, %240, %cst_85 [1] : vector<16x32xf32> to vector<16xf32>
    %242 = vector.shape_cast %241 : vector<16xf32> to vector<16x1xf32>
    %cst_86 = arith.constant 3.200000e+01 : f32
    %243 = vector.broadcast %cst_86 : f32 to vector<16x1xf32>
    %244 = arith.divf %242, %243 : vector<16x1xf32>
    %245 = vector.broadcast %244 : vector<16x1xf32> to vector<16x32xf32>
    %246 = arith.subf %240, %245 : vector<16x32xf32>
    %247 = arith.mulf %246, %246 : vector<16x32xf32>
    %cst_87 = arith.constant dense<0.000000e+00> : vector<16xf32>
    %248 = vector.multi_reduction <add>, %247, %cst_87 [1] : vector<16x32xf32> to vector<16xf32>
    %249 = vector.shape_cast %248 : vector<16xf32> to vector<16x1xf32>
    %cst_88 = arith.constant 3.200000e+01 : f32
    %250 = vector.broadcast %cst_88 : f32 to vector<16x1xf32>
    %251 = arith.divf %249, %250 : vector<16x1xf32>
    %cst_89 = arith.constant 9.99999974E-6 : f32
    %252 = vector.broadcast %cst_89 : f32 to vector<16x1xf32>
    %253 = arith.addf %251, %252 : vector<16x1xf32>
    %254 = math.rsqrt %253 : vector<16x1xf32>
    %255 = vector.broadcast %254 : vector<16x1xf32> to vector<16x32xf32>
    %256 = arith.mulf %246, %255 : vector<16x32xf32>
    %257 = vector.broadcast %140 : vector<1x32xf32> to vector<16x32xf32>
    %258 = arith.mulf %256, %257 : vector<16x32xf32>
    %259 = vector.broadcast %141 : vector<1x32xf32> to vector<16x32xf32>
    %260 = arith.addf %258, %259 : vector<16x32xf32>
    %c1_90 = arith.constant 1 : index
    %c0_91 = arith.constant 0 : index
    %c0_92 = arith.constant 0 : index
    %261 = vector.load %arg10[%c1_90, %c0_91, %c0_92] : memref<2x16x32xf32, #tpu.memory_space<vmem>>, vector<1x16x32xf32>
    %262 = vector.shape_cast %261 : vector<1x16x32xf32> to vector<16x32xf32>
    %263 = vector.shape_cast %260 : vector<16x32xf32> to vector<1x16x32xf32>
    tpu.vector_store %arg10[%c1_90, %c0_91, %c0_92], %263 {strides = array<i32>} : memref<2x16x32xf32, #tpu.memory_space<vmem>>, vector<1x16x32xf32>,
    %264 = arith.truncf %260 : vector<16x32xf32> to vector<16x32xbf16>
    %c0_93 = arith.constant 0 : index
    %c0_94 = arith.constant 0 : index
    %265 = vector.load %arg9[%c0_93, %c0_94] : memref<32x128xbf16, #tpu.memory_space<vmem>>, vector<32x128xbf16>
    %cst_95 = arith.constant dense<0.000000e+00> : vector<16x128xf32>
    %266 = tpu.matmul %264, %265, %cst_95 {dimension_numbers = #tpu.dot_dimension_numbers<[1], [0], [0], [1], [0, 0, 1, 1], [], []>} : vector<16x32xbf16>, vector<32x128xbf16>, vector<16x128xf32> -> vector<16x128xf32>
    %c0_96 = arith.constant 0 : index
    %c0_97 = arith.constant 0 : index
    %267 = vector.load %arg11[%c0_96, %c0_97] : memref<16x128xf32, #tpu.memory_space<vmem>>, vector<16x128xf32>
    tpu.vector_store %arg11[%c0_96, %c0_97], %266 {strides = array<i32>} : memref<16x128xf32, #tpu.memory_space<vmem>>, vector<16x128xf32>,
    return
  }
}

</mosaic_0001>

<bundles_post_ra>
// kernel: tile.8
= control target key start
LH: loop header
LB: loop body
LE: loop exit
PB: predicated region body
PF: predicated region fallthrough
CT: control target
= control target key end

     0   :  { %s504_s0 = inlined_call_operand.vmem [shape: f32[16,16], index: 0, kind: input, shape index: {}]   ;;  %s505_s1 = inlined_call_operand.vmem [shape: f32[4,16,4,16], index: 1, kind: output, shape index: {}]  }
   0x1   :  { %v4_v0 = vld [vmem:[%s504_s0] ss:$0 sm:$0xff]  ;;  %v179_v1 = vld [vmem:[%s504_s0 + $0x1] ss:$0 sm:$0xff]  ;;  %v184_v2 = vld [vmem:[%s504_s0 + $0x2] ss:$0 sm:$0xff] }
   0x2   :  { %5 = vst [vmem:[%s505_s1] sm:$0xf] %v4_v0  ;;  %176 = vst [vmem:[%s505_s1 + $0x40] sm:$0xf] %v4_v0  ;;  %v189_v3 = vld [vmem:[%s504_s0 + $0x3] ss:$0 sm:$0xff] }
   0x3   :  { %177 = vst [vmem:[%s505_s1 + $0x80] sm:$0xf] %v4_v0  ;;  %178 = vst [vmem:[%s505_s1 + $0xc0] sm:$0xf] %v4_v0  ;;  %v194_v4 = vld [vmem:[%s504_s0 + $0x4] ss:$0 sm:$0xff] }
   0x4   :  { %180 = vst [vmem:[%s505_s1 + $0x4] sm:$0xf] %v179_v1  ;;  %181 = vst [vmem:[%s505_s1 + $0x44] sm:$0xf] %v179_v1  ;;  %v199_v5 = vld [vmem:[%s504_s0 + $0x5] ss:$0 sm:$0xff] }
   0x5   :  { %182 = vst [vmem:[%s505_s1 + $0x84] sm:$0xf] %v179_v1  ;;  %183 = vst [vmem:[%s505_s1 + $0xc4] sm:$0xf] %v179_v1  ;;  %v204_v6 = vld [vmem:[%s504_s0 + $0x6] ss:$0 sm:$0xff] }
   0x6   :  { %185 = vst [vmem:[%s505_s1 + $0x8] sm:$0xf] %v184_v2  ;;  %186 = vst [vmem:[%s505_s1 + $0x48] sm:$0xf] %v184_v2  ;;  %v209_v7 = vld [vmem:[%s504_s0 + $0x7] ss:$0 sm:$0xff] }
   0x7   :  { %187 = vst [vmem:[%s505_s1 + $0x88] sm:$0xf] %v184_v2  ;;  %188 = vst [vmem:[%s505_s1 + $0xc8] sm:$0xf] %v184_v2  ;;  %v214_v8 = vld [vmem:[%s504_s0 + $0x8] ss:$0 sm:$0xff] }
   0x8   :  { %190 = vst [vmem:[%s505_s1 + $0xc] sm:$0xf] %v189_v3  ;;  %191 = vst [vmem:[%s505_s1 + $0x4c] sm:$0xf] %v189_v3  ;;  %v219_v9 = vld [vmem:[%s504_s0 + $0x9] ss:$0 sm:$0xff] }
   0x9   :  { %192 = vst [vmem:[%s505_s1 + $0x8c] sm:$0xf] %v189_v3  ;;  %193 = vst [vmem:[%s505_s1 + $0xcc] sm:$0xf] %v189_v3  ;;  %v224_v10 = vld [vmem:[%s504_s0 + $0xa] ss:$0 sm:$0xff] }
   0xa   :  { %195 = vst [vmem:[%s505_s1 + $0x10] sm:$0xf] %v194_v4  ;;  %196 = vst [vmem:[%s505_s1 + $0x50] sm:$0xf] %v194_v4  ;;  %v229_v11 = vld [vmem:[%s504_s0 + $0xb] ss:$0 sm:$0xff] }
   0xb   :  { %197 = vst [vmem:[%s505_s1 + $0x90] sm:$0xf] %v194_v4  ;;  %198 = vst [vmem:[%s505_s1 + $0xd0] sm:$0xf] %v194_v4  ;;  %v234_v12 = vld [vmem:[%s504_s0 + $0xc] ss:$0 sm:$0xff] }
   0xc   :  { %200 = vst [vmem:[%s505_s1 + $0x14] sm:$0xf] %v199_v5  ;;  %201 = vst [vmem:[%s505_s1 + $0x54] sm:$0xf] %v199_v5  ;;  %v239_v13 = vld [vmem:[%s504_s0 + $0xd] ss:$0 sm:$0xff] }
   0xd   :  { %202 = vst [vmem:[%s505_s1 + $0x94] sm:$0xf] %v199_v5  ;;  %203 = vst [vmem:[%s505_s1 + $0xd4] sm:$0xf] %v199_v5  ;;  %v244_v14 = vld [vmem:[%s504_s0 + $0xe] ss:$0 sm:$0xff] }
   0xe   :  { %205 = vst [vmem:[%s505_s1 + $0x18] sm:$0xf] %v204_v6  ;;  %206 = vst [vmem:[%s505_s1 + $0x58] sm:$0xf] %v204_v6  ;;  %v249_v15 = vld [vmem:[%s504_s0 + $0xf] ss:$0 sm:$0xff] }
   0xf   :  { %207 = vst [vmem:[%s505_s1 + $0x98] sm:$0xf] %v204_v6  ;;  %208 = vst [vmem:[%s505_s1 + $0xd8] sm:$0xf] %v204_v6 }
  0x10   :  { %210 = vst [vmem:[%s505_s1 + $0x1c] sm:$0xf] %v209_v7  ;;  %211 = vst [vmem:[%s505_s1 + $0x5c] sm:$0xf] %v209_v7 }
  0x11   :  { %212 = vst [vmem:[%s505_s1 + $0x9c] sm:$0xf] %v209_v7  ;;  %213 = vst [vmem:[%s505_s1 + $0xdc] sm:$0xf] %v209_v7 }
  0x12   :  { %215 = vst [vmem:[%s505_s1 + $0x20] sm:$0xf] %v214_v8  ;;  %216 = vst [vmem:[%s505_s1 + $0x60] sm:$0xf] %v214_v8 }
  0x13   :  { %217 = vst [vmem:[%s505_s1 + $0xa0] sm:$0xf] %v214_v8  ;;  %218 = vst [vmem:[%s505_s1 + $0xe0] sm:$0xf] %v214_v8 }
  0x14   :  { %220 = vst [vmem:[%s505_s1 + $0x24] sm:$0xf] %v219_v9  ;;  %221 = vst [vmem:[%s505_s1 + $0x64] sm:$0xf] %v219_v9 }
  0x15   :  { %222 = vst [vmem:[%s505_s1 + $0xa4] sm:$0xf] %v219_v9  ;;  %223 = vst [vmem:[%s505_s1 + $0xe4] sm:$0xf] %v219_v9 }
  0x16   :  { %225 = vst [vmem:[%s505_s1 + $0x28] sm:$0xf] %v224_v10  ;;  %226 = vst [vmem:[%s505_s1 + $0x68] sm:$0xf] %v224_v10 }
  0x17   :  { %227 = vst [vmem:[%s505_s1 + $0xa8] sm:$0xf] %v224_v10  ;;  %228 = vst [vmem:[%s505_s1 + $0xe8] sm:$0xf] %v224_v10 }
  0x18   :  { %230 = vst [vmem:[%s505_s1 + $0x2c] sm:$0xf] %v229_v11  ;;  %231 = vst [vmem:[%s505_s1 + $0x6c] sm:$0xf] %v229_v11 }
  0x19   :  { %232 = vst [vmem:[%s505_s1 + $0xac] sm:$0xf] %v229_v11  ;;  %233 = vst [vmem:[%s505_s1 + $0xec] sm:$0xf] %v229_v11 }
  0x1a   :  { %235 = vst [vmem:[%s505_s1 + $0x30] sm:$0xf] %v234_v12  ;;  %236 = vst [vmem:[%s505_s1 + $0x70] sm:$0xf] %v234_v12 }
  0x1b   :  { %237 = vst [vmem:[%s505_s1 + $0xb0] sm:$0xf] %v234_v12  ;;  %238 = vst [vmem:[%s505_s1 + $0xf0] sm:$0xf] %v234_v12 }
  0x1c   :  { %240 = vst [vmem:[%s505_s1 + $0x34] sm:$0xf] %v239_v13  ;;  %241 = vst [vmem:[%s505_s1 + $0x74] sm:$0xf] %v239_v13 }
  0x1d   :  { %242 = vst [vmem:[%s505_s1 + $0xb4] sm:$0xf] %v239_v13  ;;  %243 = vst [vmem:[%s505_s1 + $0xf4] sm:$0xf] %v239_v13 }
  0x1e   :  { %245 = vst [vmem:[%s505_s1 + $0x38] sm:$0xf] %v244_v14  ;;  %246 = vst [vmem:[%s505_s1 + $0x78] sm:$0xf] %v244_v14 }
  0x1f   :  { %247 = vst [vmem:[%s505_s1 + $0xb8] sm:$0xf] %v244_v14  ;;  %248 = vst [vmem:[%s505_s1 + $0xf8] sm:$0xf] %v244_v14 }
  0x20   :  { %250 = vst [vmem:[%s505_s1 + $0x3c] sm:$0xf] %v249_v15  ;;  %251 = vst [vmem:[%s505_s1 + $0x7c] sm:$0xf] %v249_v15 }
  0x21   :  { %252 = vst [vmem:[%s505_s1 + $0xbc] sm:$0xf] %v249_v15  ;;  %253 = vst [vmem:[%s505_s1 + $0xfc] sm:$0xf] %v249_v15 }

// kernel: tile.9
= control target key start
LH: loop header
LB: loop body
LE: loop exit
PB: predicated region body
PF: predicated region fallthrough
CT: control target
= control target key end

     0   :  { %vm322_vm0 = vcmask 1047556   ;;  %s806_s10 = smov 48   ;;  %vm324_vm1 = vcmask 130048   ;;  %s808_s28 = smov 16   ;;  %vm397_vm2 = vcmask 523648   ;;  %vm484_vm3 = vcmask 392448   ;;  %s1195_s0 = inlined_call_operand.vmem [shape: f32[4,16,4,16], index: 0, kind: input, shape index: {}]   ;;  %s1196_s1 = inlined_call_operand.vmem [shape: f32[64,64], index: 1, kind: output, shape index: {}]  }
   0x1   :  { %v768_v0 = vld [vmem:[%s1195_s0 + $0x1c] sm:$0xf]  ;;  %v769_v1 = vld [vmem:[%s1195_s0 + $0x18] sm:$0xf]  ;;  %v770_v2 = vld [vmem:[%s1195_s0 + $0x14] sm:$0xf] }
   0x2   :  { %288 = vst [vmem:[#allocation0 + $0x38] sm:$0xf] %v768_v0  ;;  %293 = vst [vmem:[#allocation0 + $0x30] sm:$0xf] %v769_v1  ;;  %v771_v3 = vld [vmem:[%s1195_s0 + $0x10] sm:$0xf] }
   0x3   :  { %298 = vst [vmem:[#allocation0 + $0x28] sm:$0xf] %v770_v2  ;;  %v772_v4 = vld [vmem:[%s1195_s0 + $0xc] sm:$0xf]  ;;  %v773_v5 = vld [vmem:[%s1195_s0 + $0x8] sm:$0xf] }
   0x4   :  { %303 = vst [vmem:[#allocation0 + $0x20] sm:$0xf] %v771_v3  ;;  %308 = vst [vmem:[#allocation0 + $0x18] sm:$0xf] %v772_v4  ;;  %v774_v6 = vld [vmem:[%s1195_s0 + $0x4] sm:$0xf] }
   0x5   :  { %313 = vst [vmem:[#allocation0 + $0x10] sm:$0xf] %v773_v5  ;;  %v318_v7 = vld [vmem:[%s1195_s0] sm:$0xf]  ;;  %317 = vst [vmem:[#allocation0 + $0x8] sm:$0xf] %v774_v6 }
   0x6   :  { %319 = vst [vmem:[#allocation0] sm:$0xf] %v318_v7  ;;  %v760_v8 = vld [vmem:[%s1195_s0 + $0x3c] sm:$0xf]  ;;  %v761_v9 = vld [vmem:[%s1195_s0 + $0x38] sm:$0xf] }
   0x7   :  { %v762_v10 = vld [vmem:[%s1195_s0 + $0x34] sm:$0xf]  ;;  %248 = vst [vmem:[#allocation0 + $0x78] sm:$0xf] %v760_v8  ;;  %253 = vst [vmem:[#allocation0 + $0x70] sm:$0xf] %v761_v9 }
   0x8   :  { %258 = vst [vmem:[#allocation0 + $0x68] sm:$0xf] %v762_v10  ;;  %v763_v11 = vld [vmem:[%s1195_s0 + $0x30] sm:$0xf]  ;;  %v764_v12 = vld [vmem:[%s1195_s0 + $0x2c] sm:$0xf] }
   0x9   :  { %v765_v13 = vld [vmem:[%s1195_s0 + $0x28] sm:$0xf]  ;;  %263 = vst [vmem:[#allocation0 + $0x60] sm:$0xf] %v763_v11  ;;  %268 = vst [vmem:[#allocation0 + $0x58] sm:$0xf] %v764_v12 }
   0xa   :  { %273 = vst [vmem:[#allocation0 + $0x50] sm:$0xf] %v765_v13  ;;  %v766_v14 = vld [vmem:[%s1195_s0 + $0x24] sm:$0xf]  ;;  %v767_v15 = vld [vmem:[%s1195_s0 + $0x20] sm:$0xf] }
   0xb   :  { %v736_v16 = vld [vmem:[%s1195_s0 + $0x9c] sm:$0xf]  ;;  %278 = vst [vmem:[#allocation0 + $0x48] sm:$0xf] %v766_v14  ;;  %283 = vst [vmem:[#allocation0 + $0x40] sm:$0xf] %v767_v15 }
   0xc   :  { %128 = vst [vmem:[#allocation0 + $0x138] sm:$0xf] %v736_v16  ;;  %v737_v17 = vld [vmem:[%s1195_s0 + $0x98] sm:$0xf]  ;;  %v738_v18 = vld [vmem:[%s1195_s0 + $0x94] sm:$0xf] }
   0xd   :  { %v739_v19 = vld [vmem:[%s1195_s0 + $0x90] sm:$0xf]  ;;  %133 = vst [vmem:[#allocation0 + $0x130] sm:$0xf] %v737_v17  ;;  %138 = vst [vmem:[#allocation0 + $0x128] sm:$0xf] %v738_v18 }
   0xe   :  { %143 = vst [vmem:[#allocation0 + $0x120] sm:$0xf] %v739_v19  ;;  %v740_v20 = vld [vmem:[%s1195_s0 + $0x8c] sm:$0xf]  ;;  %v741_v21 = vld [vmem:[%s1195_s0 + $0x88] sm:$0xf] }
   0xf   :  { %v742_v22 = vld [vmem:[%s1195_s0 + $0x84] sm:$0xf]  ;;  %148 = vst [vmem:[#allocation0 + $0x118] sm:$0xf] %v740_v20  ;;  %153 = vst [vmem:[#allocation0 + $0x110] sm:$0xf] %v741_v21 }
  0x10   :  { %158 = vst [vmem:[#allocation0 + $0x108] sm:$0xf] %v742_v22  ;;  %v743_v23 = vld [vmem:[%s1195_s0 + $0x80] sm:$0xf]  ;;  %v728_v24 = vld [vmem:[%s1195_s0 + $0xbc] sm:$0xf] }
  0x11   :  { %v729_v25 = vld [vmem:[%s1195_s0 + $0xb8] sm:$0xf]  ;;  %163 = vst [vmem:[#allocation0 + $0x100] sm:$0xf] %v743_v23  ;;  %88 = vst [vmem:[#allocation0 + $0x178] sm:$0xf] %v728_v24 }
  0x12   :  { %v392_v26 = vld [vmem:[#allocation0 + $0x3] ss:$8 sm:$0xf0]   ;;  %93 = vst [vmem:[#allocation0 + $0x170] sm:$0xf] %v729_v25  ;;  %vm571_vm4 = vcmask 261248  }
  0x13   :  { %v730_v27 = vld [vmem:[%s1195_s0 + $0xb4] sm:$0xf]  ;;  %v390_v28 = vld [vmem:[#allocation0 + $0x3] ss:$8 sm:$0xf]  }
  0x14   :  { %98 = vst [vmem:[#allocation0 + $0x168] sm:$0xf] %v730_v27  ;;  %v731_v29 = vld [vmem:[%s1195_s0 + $0xb0] sm:$0xf]  ;;  %v394_v30 = vsel %vm322_vm0, %v392_v26, %v390_v28  ;;  %v732_v31 = vld [vmem:[%s1195_s0 + $0xac] sm:$0xf] }
  0x15   :  { %103 = vst [vmem:[#allocation0 + $0x160] sm:$0xf] %v731_v29  ;;  %v733_v32 = vld [vmem:[%s1195_s0 + $0xa8] sm:$0xf]  ;;  %v734_v33 = vld [vmem:[%s1195_s0 + $0xa4] sm:$0xf]  ;;  %395 = vrot.lane.b32.xlu0 %v394_v30, %s806_s10 }
  0x16   :  { %v413_v34 = vld [vmem:[#allocation0 + $0x43] ss:$8 sm:$0xf0]   ;;  %108 = vst [vmem:[#allocation0 + $0x158] sm:$0xf] %v732_v31 }
  0x17   :  { %113 = vst [vmem:[#allocation0 + $0x150] sm:$0xf] %v733_v32  ;;  %118 = vst [vmem:[#allocation0 + $0x148] sm:$0xf] %v734_v33  ;;  %v735_v35 = vld [vmem:[%s1195_s0 + $0xa0] sm:$0xf] }
  0x18   :  { %v411_v36 = vld [vmem:[#allocation0 + $0x43] ss:$8 sm:$0xf]   ;;  %123 = vst [vmem:[#allocation0 + $0x140] sm:$0xf] %v735_v35 }
  0x19   :  { %v752_v37 = vld [vmem:[%s1195_s0 + $0x5c] sm:$0xf]  ;;  %v415_v38 = vsel %vm322_vm0, %v413_v34, %v411_v36  ;;  %v402_v39 = vld [vmem:[#allocation0 + $0x103] ss:$8 sm:$0xf0]  }
  0x1a   :  { %208 = vst [vmem:[#allocation0 + $0xb8] sm:$0xf] %v752_v37  ;;  %v753_v40 = vld [vmem:[%s1195_s0 + $0x58] sm:$0xf]  ;;  %416 = vrot.lane.b32.xlu1 %v415_v38, %s806_s10  ;;  %v754_v41 = vld [vmem:[%s1195_s0 + $0x54] sm:$0xf] }
  0x1b   :  { %213 = vst [vmem:[#allocation0 + $0xb0] sm:$0xf] %v753_v40  ;;  %v755_v42 = vld [vmem:[%s1195_s0 + $0x50] sm:$0xf]  ;;  %v756_v43 = vld [vmem:[%s1195_s0 + $0x4c] sm:$0xf] }
  0x1c   :  { %v400_v44 = vld [vmem:[#allocation0 + $0x103] ss:$8 sm:$0xf]   ;;  %218 = vst [vmem:[#allocation0 + $0xa8] sm:$0xf] %v754_v41 }
  0x1d   :  { %223 = vst [vmem:[#allocation0 + $0xa0] sm:$0xf] %v755_v42  ;;  %228 = vst [vmem:[#allocation0 + $0x98] sm:$0xf] %v756_v43  ;;  %v757_v45 = vld [vmem:[%s1195_s0 + $0x48] sm:$0xf]  ;;  %v404_v46 = vsel %vm322_vm0, %v402_v39, %v400_v44 }
  0x1e   :  { %233 = vst [vmem:[#allocation0 + $0x90] sm:$0xf] %v757_v45  ;;  %v758_v47 = vld [vmem:[%s1195_s0 + $0x44] sm:$0xf]  ;;  %v759_v48 = vld [vmem:[%s1195_s0 + $0x40] sm:$0xf]  ;;  %405 = vrot.lane.b32.xlu0 %v404_v46, %s806_s10 }
  0x1f   :  { %v720_v49 = vld [vmem:[%s1195_s0 + $0xdc] sm:$0xf]  ;;  %v424_v50 = vld [vmem:[#allocation0 + $0x143] ss:$8 sm:$0xf0]  }
  0x20   :  { %238 = vst [vmem:[#allocation0 + $0x88] sm:$0xf] %v758_v47  ;;  %243 = vst [vmem:[#allocation0 + $0x80] sm:$0xf] %v759_v48  ;;  %v721_v51 = vld [vmem:[%s1195_s0 + $0xd8] sm:$0xf] }
  0x21   :  { %48 = vst [vmem:[#allocation0 + $0x1b8] sm:$0xf] %v720_v49  ;;  %53 = vst [vmem:[#allocation0 + $0x1b0] sm:$0xf] %v721_v51  ;;  %v722_v52 = vld [vmem:[%s1195_s0 + $0xd4] sm:$0xf] }
  0x22   :  { %v723_v53 = vld [vmem:[%s1195_s0 + $0xd0] sm:$0xf]  ;;  %v724_v54 = vld [vmem:[%s1195_s0 + $0xcc] sm:$0xf]  ;;  %58 = vst [vmem:[#allocation0 + $0x1a8] sm:$0xf] %v722_v52 }
  0x23   :  { %v422_v55 = vld [vmem:[#allocation0 + $0x143] ss:$8 sm:$0xf]   ;;  %63 = vst [vmem:[#allocation0 + $0x1a0] sm:$0xf] %v723_v53 }
  0x24   :  { %68 = vst [vmem:[#allocation0 + $0x198] sm:$0xf] %v724_v54  ;;  %v725_v56 = vld [vmem:[%s1195_s0 + $0xc8] sm:$0xf]  ;;  %v426_v57 = vsel %vm322_vm0, %v424_v50, %v422_v55  ;;  %v726_v58 = vld [vmem:[%s1195_s0 + $0xc4] sm:$0xf] }
  0x25   :  { %73 = vst [vmem:[#allocation0 + $0x190] sm:$0xf] %v725_v56  ;;  %v727_v59 = vld [vmem:[%s1195_s0 + $0xc0] sm:$0xf]  ;;  %v744_v60 = vld [vmem:[%s1195_s0 + $0x7c] sm:$0xf]  ;;  %427 = vrot.lane.b32.xlu1 %v426_v57, %s806_s10 }
  0x26   :  { %78 = vst [vmem:[#allocation0 + $0x188] sm:$0xf] %v726_v58  ;;  %83 = vst [vmem:[#allocation0 + $0x180] sm:$0xf] %v727_v59  ;;  %v745_v61 = vld [vmem:[%s1195_s0 + $0x78] sm:$0xf] }
  0x27   :  { %168 = vst [vmem:[#allocation0 + $0xf8] sm:$0xf] %v744_v60  ;;  %v746_v62 = vld [vmem:[%s1195_s0 + $0x74] sm:$0xf]  ;;  %v747_v63 = vld [vmem:[%s1195_s0 + $0x70] sm:$0xf] }
  0x28   :  { %v435_v0 = vld [vmem:[#allocation0 + $0x83] ss:$8 sm:$0xf0]   ;;  %173 = vst [vmem:[#allocation0 + $0xf0] sm:$0xf] %v745_v61 }
  0x29   :  { %178 = vst [vmem:[#allocation0 + $0xe8] sm:$0xf] %v746_v62  ;;  %183 = vst [vmem:[#allocation0 + $0xe0] sm:$0xf] %v747_v63  ;;  %v748_v1 = vld [vmem:[%s1195_s0 + $0x6c] sm:$0xf] }
  0x2a   :  { %188 = vst [vmem:[#allocation0 + $0xd8] sm:$0xf] %v748_v1  ;;  %v749_v2 = vld [vmem:[%s1195_s0 + $0x68] sm:$0xf]  ;;  %v750_v3 = vld [vmem:[%s1195_s0 + $0x64] sm:$0xf] }
  0x2b   :  { %v751_v4 = vld [vmem:[%s1195_s0 + $0x60] sm:$0xf]  ;;  %193 = vst [vmem:[#allocation0 + $0xd0] sm:$0xf] %v749_v2  ;;  %198 = vst [vmem:[#allocation0 + $0xc8] sm:$0xf] %v750_v3 }
  0x2c   :  { %v433_v5 = vld [vmem:[#allocation0 + $0x83] ss:$8 sm:$0xf]   ;;  %203 = vst [vmem:[#allocation0 + $0xc0] sm:$0xf] %v751_v4 }
  0x2d   :  { %v712_v6 = vld [vmem:[%s1195_s0 + $0xfc] sm:$0xf]  ;;  %v437_v7 = vsel %vm322_vm0, %v435_v0, %v433_v5  ;;  %v713_v8 = vld [vmem:[%s1195_s0 + $0xf8] sm:$0xf]  ;;  %v714_v9 = vld [vmem:[%s1195_s0 + $0xf4] sm:$0xf] }
  0x2e   :  { %8 = vst [vmem:[#allocation0 + $0x1f8] sm:$0xf] %v712_v6  ;;  %v715_v10 = vld [vmem:[%s1195_s0 + $0xf0] sm:$0xf]  ;;  %438 = vrot.lane.b32.xlu0 %v437_v7, %s806_s10  ;;  %13 = vst [vmem:[#allocation0 + $0x1f0] sm:$0xf] %v713_v8 }
  0x2f   :  { %v446_v11 = vld [vmem:[#allocation0 + $0x183] ss:$8 sm:$0xf0]   ;;  %18 = vst [vmem:[#allocation0 + $0x1e8] sm:$0xf] %v714_v9 }
  0x30   :  { %23 = vst [vmem:[#allocation0 + $0x1e0] sm:$0xf] %v715_v10  ;;  %v716_v12 = vld [vmem:[%s1195_s0 + $0xec] sm:$0xf]  ;;  %v717_v13 = vld [vmem:[%s1195_s0 + $0xe8] sm:$0xf] }
  0x31   :  { %28 = vst [vmem:[#allocation0 + $0x1d8] sm:$0xf] %v716_v12  ;;  %v718_v14 = vld [vmem:[%s1195_s0 + $0xe4] sm:$0xf]  ;;  %v719_v15 = vld [vmem:[%s1195_s0 + $0xe0] sm:$0xf] }
  0x32   :  { %v444_v16 = vld [vmem:[#allocation0 + $0x183] ss:$8 sm:$0xf]   ;;  %33 = vst [vmem:[#allocation0 + $0x1d0] sm:$0xf] %v717_v13  ;;  %s807_s0 = smov 32  }
  0x33   :  { %38 = vst [vmem:[#allocation0 + $0x1c8] sm:$0xf] %v718_v14  ;;  %43 = vst [vmem:[#allocation0 + $0x1c0] sm:$0xf] %v719_v15  ;;  %v448_v17 = vsel %vm322_vm0, %v446_v11, %v444_v16 }
  0x34   :  { %v457_v18 = vld [vmem:[#allocation0 + $0xc3] ss:$8 sm:$0xf0]   ;;  %449 = vrot.lane.b32.xlu1 %v448_v17, %s806_s10  ;;  %v477_v19 = vld [vmem:[#allocation0 + $0x2] ss:$8 sm:$0xf]  }
  0x35   :  { %v455_v20 = vld [vmem:[#allocation0 + $0xc3] ss:$8 sm:$0xf]   ;;  %v479_v21 = vld [vmem:[#allocation0 + $0x2] ss:$8 sm:$0xf0]  }
  0x36   :  { %v459_v22 = vsel %vm322_vm0, %v457_v18, %v455_v20  ;;  %v487_v24 = vld [vmem:[#allocation0 + $0x102] ss:$8 sm:$0xf]   ;;  %v481_v25 = vsel %vm322_vm0, %v479_v21, %v477_v19  ;;  %v564_v45 = vld [vmem:[#allocation0 + $0x1] ss:$8 sm:$0xf]  }
  0x37   :  { %460 = vrot.lane.b32.xlu0 %v459_v22, %s806_s10  ;;  %v468_v23 = vld [vmem:[#allocation0 + $0x1c3] ss:$8 sm:$0xf0]   ;;  %v489_v26 = vld [vmem:[#allocation0 + $0x102] ss:$8 sm:$0xf0]  }
  0x38   :  { %v498_v27 = vld [vmem:[#allocation0 + $0x42] ss:$8 sm:$0xf]   ;;  %v491_v31 = vsel %vm322_vm0, %v489_v26, %v487_v24  ;;  %v566_v48 = vld [vmem:[#allocation0 + $0x1] ss:$8 sm:$0xf0]  }
  0x39   :  { %v500_v29 = vld [vmem:[#allocation0 + $0x42] ss:$8 sm:$0xf0]   ;;  %v320_v49 = vld [vmem:[#allocation0] ss:$8 sm:$0xf]   ;;  %v568_v63 = vsel %vm322_vm0, %v566_v48, %v564_v45 }
  0x3a   :  { %v466_v28 = vld [vmem:[#allocation0 + $0x1c3] ss:$8 sm:$0xf]   ;;  %v502_v32 = vsel %vm322_vm0, %v500_v29, %v498_v27  ;;  %v509_v33 = vld [vmem:[#allocation0 + $0x142] ss:$8 sm:$0xf]  }
  0x3b   :  { %v470_v30 = vsel %vm322_vm0, %v468_v23, %v466_v28  ;;  %482 = vrot.lane.b32.xlu0 %v481_v25, %s807_s0  ;;  %v511_v34 = vld [vmem:[#allocation0 + $0x142] ss:$8 sm:$0xf0]   ;;  %v321_v50 = vld [vmem:[#allocation0] ss:$8 sm:$0xf0]  }
  0x3c   :  { %471 = vrot.lane.b32.xlu1 %v470_v30, %s806_s10  ;;  %v520_v35 = vld [vmem:[#allocation0 + $0x82] ss:$8 sm:$0xf]   ;;  %v513_v37 = vsel %vm322_vm0, %v511_v34, %v509_v33  ;;  %v327_v51 = vld [vmem:[#allocation0 + $0x40] ss:$8 sm:$0xf]   ;;  %v323_v52 = vsel %vm322_vm0, %v321_v50, %v320_v49 }
  0x3d   :  { %v522_v36 = vld [vmem:[#allocation0 + $0x82] ss:$8 sm:$0xf0]   ;;  %v329_v53 = vld [vmem:[#allocation0 + $0x40] ss:$8 sm:$0xf0]  }
  0x3e   :  { %v524_v38 = vsel %vm322_vm0, %v522_v36, %v520_v35  ;;  %v531_v39 = vld [vmem:[#allocation0 + $0x182] ss:$8 sm:$0xf]   ;;  %v354_v54 = vld [vmem:[#allocation0 + $0x100] ss:$8 sm:$0xf]   ;;  %v331_v59 = vsel %vm322_vm0, %v329_v53, %v327_v51 }
  0x3f   :  { %503 = vrot.lane.b32.xlu0 %v502_v32, %s807_s0  ;;  %v533_v40 = vld [vmem:[#allocation0 + $0x182] ss:$8 sm:$0xf0]   ;;  %v574_v55 = vld [vmem:[#allocation0 + $0x101] ss:$8 sm:$0xf]  }
  0x40   :  { %492 = vrot.lane.b32.xlu1 %v491_v31, %s807_s0  ;;  %v542_v41 = vld [vmem:[#allocation0 + $0xc2] ss:$8 sm:$0xf]   ;;  %v535_v46 = vsel %vm322_vm0, %v533_v40, %v531_v39  ;;  %v576_v56 = vld [vmem:[#allocation0 + $0x101] ss:$8 sm:$0xf0]  }
  0x41   :  { %v544_v42 = vld [vmem:[#allocation0 + $0xc2] ss:$8 sm:$0xf0]   ;;  %v585_v57 = vld [vmem:[#allocation0 + $0x41] ss:$8 sm:$0xf]   ;;  %v578_v13 = vsel %vm322_vm0, %v576_v56, %v574_v55 }
  0x42   :  { %v553_v43 = vld [vmem:[#allocation0 + $0x1c2] ss:$8 sm:$0xf]   ;;  %v546_v47 = vsel %vm322_vm0, %v544_v42, %v542_v41  ;;  %v587_v58 = vld [vmem:[#allocation0 + $0x41] ss:$8 sm:$0xf0]  }
  0x43   :  { %525 = vrot.lane.b32.xlu0 %v524_v38, %s807_s0  ;;  %v555_v44 = vld [vmem:[#allocation0 + $0x1c2] ss:$8 sm:$0xf0]   ;;  %325 = vst.msk [vmem:[%s1196_s1] sm:$0xff] %vm324_vm1, %v323_v52   ;;  %775 = vst.msk [vmem:[%s1196_s1 + $0x8] sm:$0xff] %vm324_vm1, %v331_v59   ;;  %v589_v14 = vsel %vm322_vm0, %v587_v58, %v585_v57 }
  0x44   :  { %514 = vrot.lane.b32.xlu1 %v513_v37, %s807_s0  ;;  %v356_v60 = vld [vmem:[#allocation0 + $0x100] ss:$8 sm:$0xf0]   ;;  %v557_v62 = vsel %vm322_vm0, %v555_v44, %v553_v43  ;;  %v596_v9 = vld [vmem:[#allocation0 + $0x141] ss:$8 sm:$0xf]  }
  0x45   :  { %v363_v61 = vld [vmem:[#allocation0 + $0x140] ss:$8 sm:$0xf]   ;;  %v358_v0 = vsel %vm322_vm0, %v356_v60, %v354_v54  ;;  %v598_v15 = vld [vmem:[#allocation0 + $0x141] ss:$8 sm:$0xf0]  }
  0x46   :  { %v365_v1 = vld [vmem:[#allocation0 + $0x140] ss:$8 sm:$0xf0]   ;;  %778 = vst.msk [vmem:[%s1196_s1 + $0x20] sm:$0xff] %vm324_vm1, %v358_v0   ;;  %v600_v21 = vsel %vm322_vm0, %v598_v15, %v596_v9 }
  0x47   :  { %547 = vrot.lane.b32.xlu0 %v546_v47, %s807_s0  ;;  %v336_v2 = vld [vmem:[#allocation0 + $0x80] ss:$8 sm:$0xf]   ;;  %v367_v3 = vsel %vm322_vm0, %v365_v1, %v363_v61  ;;  %v607_v18 = vld [vmem:[#allocation0 + $0x81] ss:$8 sm:$0xf]  }
  0x48   :  { %536 = vrot.lane.b32.xlu1 %v535_v46, %s807_s0  ;;  %v338_v4 = vld [vmem:[#allocation0 + $0x80] ss:$8 sm:$0xf0]   ;;  %779 = vst.msk [vmem:[%s1196_s1 + $0x28] sm:$0xff] %vm324_vm1, %v367_v3  }
  0x49   :  { %v372_v5 = vld [vmem:[#allocation0 + $0x180] ss:$8 sm:$0xf]   ;;  %v340_v6 = vsel %vm322_vm0, %v338_v4, %v336_v2  ;;  %v609_v19 = vld [vmem:[#allocation0 + $0x81] ss:$8 sm:$0xf0]  }
  0x4a   :  { %v374_v7 = vld [vmem:[#allocation0 + $0x180] ss:$8 sm:$0xf0]   ;;  %776 = vst.msk [vmem:[%s1196_s1 + $0x10] sm:$0xff] %vm324_vm1, %v340_v6   ;;  %v611_v22 = vsel %vm322_vm0, %v609_v19, %v607_v18 }
  0x4b   :  { %v345_v8 = vld [vmem:[#allocation0 + $0xc0] ss:$8 sm:$0xf]   ;;  %569 = vrot.lane.b32.xlu0 %v568_v63, %s808_s28  ;;  %v376_v10 = vsel %vm322_vm0, %v374_v7, %v372_v5  ;;  %v618_v23 = vld [vmem:[#allocation0 + $0x181] ss:$8 sm:$0xf]  }
  0x4c   :  { %558 = vrot.lane.b32.xlu1 %v557_v62, %s807_s0  ;;  %v347_v11 = vld [vmem:[#allocation0 + $0xc0] ss:$8 sm:$0xf0]   ;;  %780 = vst.msk [vmem:[%s1196_s1 + $0x30] sm:$0xff] %vm324_vm1, %v376_v10  }
  0x4d   :  { %v381_v12 = vld [vmem:[#allocation0 + $0x1c0] ss:$8 sm:$0xf]   ;;  %v349_v16 = vsel %vm322_vm0, %v347_v11, %v345_v8  ;;  %v620_v24 = vld [vmem:[#allocation0 + $0x181] ss:$8 sm:$0xf0]  }
  0x4e   :  { %v383_v17 = vld [vmem:[#allocation0 + $0x1c0] ss:$8 sm:$0xf0]   ;;  %777 = vst.msk [vmem:[%s1196_s1 + $0x18] sm:$0xff] %vm324_vm1, %v349_v16   ;;  %v622_v27 = vsel %vm322_vm0, %v620_v24, %v618_v23 }
  0x4f   :  { %v385_v20 = vsel %vm322_vm0, %v383_v17, %v381_v12  ;;  %590 = vrot.lane.b32.xlu0 %v589_v14, %s808_s28  ;;  %v629_v25 = vld [vmem:[#allocation0 + $0xc1] ss:$8 sm:$0xf]  }
  0x50   :  { %781 = vst.msk [vmem:[%s1196_s1 + $0x38] sm:$0xff] %vm324_vm1, %v385_v20   ;;  %579 = vrot.lane.b32.xlu1 %v578_v13, %s808_s28  ;;  %v631_v26 = vld [vmem:[#allocation0 + $0xc1] ss:$8 sm:$0xf0]  }
  0x51   :  { %v633_v28 = vsel %vm322_vm0, %v631_v26, %v629_v25  ;;  %v640_v29 = vld [vmem:[#allocation0 + $0x1c1] ss:$8 sm:$0xf]  }
  0x52   :  { %v642_v30 = vld [vmem:[#allocation0 + $0x1c1] ss:$8 sm:$0xf0]  }
  0x53   :  { %612 = vrot.lane.b32.xlu0 %v611_v22, %s808_s28  ;;  %v644_v31 = vsel %vm322_vm0, %v642_v30, %v640_v29 }
  0x54   :  { %601 = vrot.lane.b32.xlu1 %v600_v21, %s808_s28 }
  0x57   :  { %634 = vrot.lane.b32.xlu0 %v633_v28, %s808_s28 }
  0x58   :  { %623 = vrot.lane.b32.xlu1 %v622_v27, %s808_s28 }
  0x5c   :  { %645 = vrot.lane.b32.xlu1 %v644_v31, %s808_s28 }
  0x87   :  { %v396_v32 = vpop.permute.xlu0 %395  }
  0x88   :  { %398 = vst.msk [vmem:[%s1196_s1] sm:$0xff] %vm397_vm2, %v396_v32  }
  0x8c   :  { %v417_v33 = vpop.permute.xlu1 %416  }
  0x8d   :  { %783 = vst.msk [vmem:[%s1196_s1 + $0x8] sm:$0xff] %vm397_vm2, %v417_v33  }
  0x90   :  { %v406_v34 = vpop.permute.xlu0 %405  }
  0x91   :  { %782 = vst.msk [vmem:[%s1196_s1 + $0x20] sm:$0xff] %vm397_vm2, %v406_v34  }
  0x97   :  { %v428_v35 = vpop.permute.xlu1 %427  }
  0x98   :  { %784 = vst.msk [vmem:[%s1196_s1 + $0x28] sm:$0xff] %vm397_vm2, %v428_v35  }
  0xa0   :  { %v439_v36 = vpop.permute.xlu0 %438  }
  0xa1   :  { %785 = vst.msk [vmem:[%s1196_s1 + $0x10] sm:$0xff] %vm397_vm2, %v439_v36  }
  0xa6   :  { %v450_v37 = vpop.permute.xlu1 %449  }
  0xa7   :  { %786 = vst.msk [vmem:[%s1196_s1 + $0x30] sm:$0xff] %vm397_vm2, %v450_v37  }
  0xa9   :  { %v461_v38 = vpop.permute.xlu0 %460  }
  0xaa   :  { %787 = vst.msk [vmem:[%s1196_s1 + $0x18] sm:$0xff] %vm397_vm2, %v461_v38  }
  0xad   :  { %v483_v40 = vpop.permute.xlu0 %482  }
  0xae   :  { %v472_v39 = vpop.permute.xlu1 %471   ;;  %485 = vst.msk [vmem:[%s1196_s1] sm:$0xff] %vm484_vm3, %v483_v40  }
  0xaf   :  { %788 = vst.msk [vmem:[%s1196_s1 + $0x38] sm:$0xff] %vm397_vm2, %v472_v39  }
  0xb1   :  { %v504_v42 = vpop.permute.xlu0 %503  }
  0xb2   :  { %v493_v41 = vpop.permute.xlu1 %492   ;;  %790 = vst.msk [vmem:[%s1196_s1 + $0x8] sm:$0xff] %vm484_vm3, %v504_v42  }
  0xb3   :  { %789 = vst.msk [vmem:[%s1196_s1 + $0x20] sm:$0xff] %vm484_vm3, %v493_v41  }
  0xb5   :  { %v526_v44 = vpop.permute.xlu0 %525  }
  0xb6   :  { %v515_v43 = vpop.permute.xlu1 %514   ;;  %792 = vst.msk [vmem:[%s1196_s1 + $0x10] sm:$0xff] %vm484_vm3, %v526_v44  }
  0xb7   :  { %791 = vst.msk [vmem:[%s1196_s1 + $0x28] sm:$0xff] %vm484_vm3, %v515_v43  }
  0xb9   :  { %v548_v46 = vpop.permute.xlu0 %547  }
  0xba   :  { %v537_v45 = vpop.permute.xlu1 %536   ;;  %794 = vst.msk [vmem:[%s1196_s1 + $0x18] sm:$0xff] %vm484_vm3, %v548_v46  }
  0xbb   :  { %793 = vst.msk [vmem:[%s1196_s1 + $0x30] sm:$0xff] %vm484_vm3, %v537_v45  }
  0xbd   :  { %v570_v48 = vpop.permute.xlu0 %569  }
  0xbe   :  { %v559_v47 = vpop.permute.xlu1 %558   ;;  %572 = vst.msk [vmem:[%s1196_s1] sm:$0xff] %vm571_vm4, %v570_v48  }
  0xbf   :  { %795 = vst.msk [vmem:[%s1196_s1 + $0x38] sm:$0xff] %vm484_vm3, %v559_v47  }
  0xc1   :  { %v591_v50 = vpop.permute.xlu0 %590  }
  0xc2   :  { %v580_v49 = vpop.permute.xlu1 %579   ;;  %797 = vst.msk [vmem:[%s1196_s1 + $0x8] sm:$0xff] %vm571_vm4, %v591_v50  }
  0xc3   :  { %796 = vst.msk [vmem:[%s1196_s1 + $0x20] sm:$0xff] %vm571_vm4, %v580_v49  }
  0xc5   :  { %v613_v52 = vpop.permute.xlu0 %612  }
  0xc6   :  { %v602_v51 = vpop.permute.xlu1 %601   ;;  %799 = vst.msk [vmem:[%s1196_s1 + $0x10] sm:$0xff] %vm571_vm4, %v613_v52  }
  0xc7   :  { %798 = vst.msk [vmem:[%s1196_s1 + $0x28] sm:$0xff] %vm571_vm4, %v602_v51  }
  0xc9   :  { %v635_v54 = vpop.permute.xlu0 %634  }
  0xca   :  { %v624_v53 = vpop.permute.xlu1 %623   ;;  %801 = vst.msk [vmem:[%s1196_s1 + $0x18] sm:$0xff] %vm571_vm4, %v635_v54  }
  0xcb   :  { %800 = vst.msk [vmem:[%s1196_s1 + $0x30] sm:$0xff] %vm571_vm4, %v624_v53  }
  0xce   :  { %v646_v55 = vpop.permute.xlu1 %645  }
  0xcf   :  { %802 = vst.msk [vmem:[%s1196_s1 + $0x38] sm:$0xff] %vm571_vm4, %v646_v55  }

// kernel: language_model_forward.1
= control target key start
LH: loop header
LB: loop body
LE: loop exit
PB: predicated region body
PF: predicated region fallthrough
CT: control target
= control target key end

     0   :  { %v2154_v0 = vmov 0.0   ;;  %vm2155_vm0 = vmmov 0   ;;  %vm73_vm1 = vcmask 261120   ;;  %vm154_vm2 = vcmask 64512   ;;  %s2157_s27 = smov 120   ;;  %s2158_s28 = smov 112   ;;  %s2716_s2 = inlined_call_operand.vmem [shape: bf16[2,32,96], index: 2, kind: input, shape index: {}]   ;;  %s2717_s0 = inlined_call_operand.vmem [shape: f32[16,32], index: 0, kind: input, shape index: {}]   ;;  %s2718_s3 = inlined_call_operand.vmem [shape: f32[2,1,96], index: 3, kind: input, shape index: {}]   ;;  %s2719_s1 = inlined_call_operand.vmem [shape: f32[64,64], index: 1, kind: input, shape index: {}]   ;;  %s2720_s4 = inlined_call_operand.vmem [shape: bf16[2,32,32], index: 4, kind: input, shape index: {}]   ;;  %s2721_s8 = inlined_call_operand.vmem [shape: f32[2,8,32], index: 8, kind: input, shape index: {}]   ;;  %s2722_s5 = inlined_call_operand.vmem [shape: bf16[2,32,128], index: 5, kind: input, shape index: {}]   ;;  %s2723_s7 = inlined_call_operand.vmem [shape: bf16[2,128,32], index: 7, kind: input, shape index: {}]   ;;  %s2724_s6 = inlined_call_operand.vmem [shape: f32[2,1,128], index: 6, kind: input, shape index: {}]   ;;  %s2725_s10 = inlined_call_operand.vmem [shape: f32[2,16,32], index: 10, kind: output, shape index: {0}]   ;;  %s2726_s9 = inlined_call_operand.vmem [shape: bf16[32,128], index: 9, kind: input, shape index: {}]   ;;  %s2727_s11 = inlined_call_operand.vmem [shape: f32[16,128], index: 11, kind: output, shape index: {1}]  }
   0x1   :  { %1790 = vmatprep.subr.bf16.mxu0 %v2154_v0  ;;  %v2036_v1 = vld [vmem:[%s2716_s2] sm:$0xff]   ;;  %1794 = vmatprep.mubr.msk.bf16.mxu0 %vm2155_vm0, %v2154_v0  ;;  %v2037_v2 = vld [vmem:[%s2716_s2 + $0x8] sm:$0xff]   ;;  %s2159_s29 = smov 96   ;;  %v2296_v38 = vld [vmem:[%s2719_s1 + $0x18] sm:$0xff]  ;;  %vm244_vm3 = vcmask 523264   ;;  %s2161_s15 = smov 8  }
   0x2   :  { %1791 = vmatpush3.bf16.msra.mxu0 %v2036_v1  ;;  %v2236_v3 = vld [vmem:[%s2717_s0] sm:$0xff]  ;;  %v2241_v4 = vld [vmem:[%s2717_s0 + $0x8] sm:$0xff]  ;;  %s2156_s0 = smov 104   ;;  %v2307_v42 = vld [vmem:[%s2719_s1 + $0x10] sm:$0xff]  ;;  %s2162_s16 = smov 24   ;;  %vm452_vm4 = vcmask 130048  }
   0x3   :  { %1792 = vmatprep.subr.bf16.mxu0 %v2154_v0  ;;  %v48_v5 = vpack.c.bf16 %v2241_v4, %v2236_v3  ;;  %v1629_v6 = vld [vmem:[%s2718_s3] ss:$0 sm:$0xff]  ;;  %v2301_v39 = vld [vmem:[%s2719_s1 + $0x8] sm:$0xff]  ;;  %v2330_v57 = vld [vmem:[%s2719_s1 + $0x30] sm:$0xff]  ;;  %s2163_s17 = smov 16   ;;  %vm455_vm5 = vcmask 195584  }
   0x4   :  { %v2291_v35 = vld [vmem:[%s2719_s1] sm:$0xff]  ;;  %v2323_v53 = vld [vmem:[%s2719_s1 + $0x28] sm:$0xff]  ;;  %v2335_v58 = vld [vmem:[%s2719_s1 + $0x38] sm:$0xff] }
   0x5   :  { %v2317_v49 = vld [vmem:[%s2719_s1 + $0x20] sm:$0xff]  ;;  %s2160_s1 = smov 64  }
   0x6   :  { %1793 = vmatpush3.bf16.msra.mxu0 %v2037_v2 }
   0x9   :  { %1795 = vmatmul.mubr.msk.bf16.vlgmr.msra.gmra.mrb[0].mxu0 %vm73_vm1, %v48_v5 }
  0xdc   :  { %v111_v7 = vpop.f32.mrb[0].mxu0 }
  0xdd   :  { %v1796_v8 = vpop.f32.mrb[1].mxu0  ;;  %v112_v10 = vadd.f32 %v1629_v6, %v111_v7 }
  0xde   :  { %v114_v9 = vpop.f32.mrb[2].mxu0 }
  0xdf   :  { %v115_v11 = vadd.f32 %v1629_v6, %v114_v9  ;;  %v1797_v12 = vpop.f32.mrb[3].mxu0 }
  0xe1   :  { %v1986_v13 = vpack.i.bf16 %v115_v11, %v112_v10  ;;  %v2250_v14 = vpack.c.bf16 %v115_v11, %v112_v10 }
  0xe3   :  { %1987 = vrot.lane.b32.xlu1 %v1986_v13, %s2156_s0  ;;  %1977 = vrot.lane.b32.xlu0 %v1986_v13, %s2157_s27 }
  0xe4   :  { %1806 = vmatprep.mubr.msk.bf16.mxu1 %vm154_vm2, %v2250_v14 }
  0xe7   :  { %1982 = vrot.lane.b32.xlu0 %v1986_v13, %s2158_s28  ;;  %146 = vrot.lane.b32.xlu1 %v2250_v14, %s2159_s29 }
 0x155   :  { %v1988_v15 = vpop.permute.xlu1 %1987  ;;  %v1978_v16 = vpop.permute.xlu0 %1977 }
 0x156   :  { %v1980_v17 = vunpack.i.h.bf16 %v1978_v16  ;;  %v1979_v18 = vunpack.i.l.bf16 %v1978_v16  ;;  %v1990_v19 = vunpack.i.h.bf16 %v1988_v15  ;;  %v1989_v20 = vunpack.i.l.bf16 %v1988_v15 }
 0x158   :  { %v2259_v21 = vpack.c.bf16 %v1980_v17, %v1979_v18  ;;  %v2265_v27 = vpack.c.bf16 %v1990_v19, %v1989_v20 }
 0x159   :  { %v1983_v22 = vpop.permute.xlu0 %1982  ;;  %v147_v23 = vpop.permute.xlu1 %146 }
 0x15a   :  { %v1985_v24 = vunpack.i.h.bf16 %v1983_v22  ;;  %v1984_v25 = vunpack.i.l.bf16 %v1983_v22  ;;  %148 = vrot.lane.b32.xlu0 %v2259_v21, %s2159_s29  ;;  %1958 = vmatprep.subr.msk.bf16.mxu1 %vm154_vm2, %v147_v23  ;;  %v168_v26 = vsel %vm154_vm2, %v147_v23, 0 }
 0x15b   :  { %1799 = vmatpush3.bf16.xpose.msra.mxu1 %v168_v26 }
 0x15c   :  { %v2267_v28 = vpack.c.bf16 %v1985_v24, %v1984_v25 }
 0x15e   :  { %152 = vrot.lane.b32.xlu0 %v2265_v27, %s2159_s29  ;;  %150 = vrot.lane.b32.xlu1 %v2267_v28, %s2159_s29 }
 0x1cc   :  { %v149_v29 = vpop.permute.xlu0 %148 }
 0x1cd   :  { %1959 = vmatprep.subr.msk.bf16.mxu1 %vm154_vm2, %v149_v29  ;;  %v171_v30 = vsel %vm154_vm2, %v149_v29, 0 }
 0x1ce   :  { %1801 = vmatpush3.bf16.xpose.msra.mxu1 %v171_v30 }
 0x1d0   :  { %v151_v31 = vpop.permute.xlu1 %150  ;;  %v153_v33 = vpop.permute.xlu0 %152 }
 0x1d1   :  { %1960 = vmatprep.subr.msk.bf16.mxu1 %vm154_vm2, %v151_v31  ;;  %v174_v32 = vsel %vm154_vm2, %v151_v31, 0  ;;  %v177_v34 = vsel %vm154_vm2, %v153_v33, 0 }
 0x1d6   :  { %1803 = vmatpush3.bf16.xpose.msra.mxu1 %v174_v32 }
 0x1d7   :  { %1961 = vmatprep.subr.msk.bf16.mxu1 %vm154_vm2, %v153_v33 }
 0x1de   :  { %1805 = vmatpush3.bf16.xpose.msra.mxu1 %v177_v34 }
 0x1df   :  { %1846 = vmatprep.subr.bf16.mxu1 %v2154_v0 }
 0x1e5   :  { %1807 = vmatmul.mubr.msk.bf16.vlgmr.msra.gmra.mrb[0].mxu1 %vm154_vm2, %v2259_v21 }
 0x1e6   :  { %1810 = vmatprep.mubr.msk.bf16.mxu1 %vm154_vm2, %v2267_v28 }
 0x1ed   :  { %1811 = vmatmul.mubr.msk.bf16.gmra.mrb[4].mxu1 %vm154_vm2, %v2265_v27 }
 0x1ee   :  { %1862 = vmatprep.mubr.msk.bf16.mxu1 %vm2155_vm0, %v2154_v0 }
 0x2b8   :  { %v1808_v36 = vpop.f32.mrb[0].mxu1 }
 0x2b9   :  { %v213_v37 = vpop.f32.mrb[1].mxu1  ;;  %v222_v47 = vadd.f32 %v1808_v36, %v2307_v42 }
 0x2ba   :  { %v214_v40 = vadd.f32 %v213_v37, %v2291_v35  ;;  %v1809_v41 = vpop.f32.mrb[2].mxu1 }
 0x2bb   :  { %v216_v43 = vpop.f32.mrb[3].mxu1  ;;  %v225_v44 = vadd.f32 %v1809_v41, %v2296_v38  ;;  %v251_v56 = vsel %vm244_vm3, %v222_v47, -inf }
 0x2bc   :  { %v217_v45 = vadd.f32 %v216_v43, %v2301_v39  ;;  %v245_v46 = vsel %vm244_vm3, %v214_v40, -inf }
 0x2bd   :  { %246 = vmax.xlane.f32.xlu1 %v245_v46  ;;  %v254_v51 = vsel %vm244_vm3, %v225_v44, -inf }
 0x2be   :  { %v248_v48 = vsel %vm244_vm3, %v217_v45, -inf }
 0x2bf   :  { %249 = vmax.xlane.f32.xlu0 %v248_v48 }
 0x2c0   :  { %v1812_v50 = vpop.f32.mrb[4].mxu1 }
 0x2c1   :  { %v229_v52 = vpop.f32.mrb[5].mxu1  ;;  %255 = vmax.xlane.f32.xlu1 %v254_v51  ;;  %v238_v61 = vadd.f32 %v1812_v50, %v2330_v57 }
 0x2c2   :  { %v230_v54 = vadd.f32 %v229_v52, %v2317_v49  ;;  %v1813_v55 = vpop.f32.mrb[6].mxu1 }
 0x2c3   :  { %v232_v59 = vpop.f32.mrb[7].mxu1  ;;  %252 = vmax.xlane.f32.xlu0 %v251_v56  ;;  %v241_v62 = vadd.f32 %v1813_v55, %v2335_v58  ;;  %v263_v2 = vsel %vm244_vm3, %v238_v61, -inf }
 0x2c4   :  { %v233_v60 = vadd.f32 %v232_v59, %v2323_v53  ;;  %v257_v63 = vsel %vm244_vm3, %v230_v54, -inf }
 0x2c5   :  { %v266_v5 = vsel %vm244_vm3, %v241_v62, -inf }
 0x2c6   :  { %v260_v1 = vsel %vm244_vm3, %v233_v60, -inf }
 0x2c7   :  { %258 = vmax.xlane.f32.xlu0 %v257_v63  ;;  %261 = vmax.xlane.f32.xlu1 %v260_v1 }
 0x2cb   :  { %264 = vmax.xlane.f32.xlu0 %v263_v2  ;;  %267 = vmax.xlane.f32.xlu1 %v266_v5 }
 0x2dc   :  { %339 = vrot.lane.b32.xlu1 %v2259_v21, %s2160_s1 }
 0x2e1   :  { %337 = vrot.lane.b32.xlu0 %v2250_v14, %s2160_s1 }
 0x34a   :  { %v247_v6 = vpop.xlane.xlu1 %246 }
 0x34b   :  { %v269_v10 = vsub.f32 %v214_v40, %v247_v6 }
 0x34c   :  { %v250_v7 = vpop.xlane.xlu0 %249 }
 0x34d   :  { %v270_v8 = vsub.f32 %v217_v45, %v250_v7  ;;  %v277_v17 = vmul.f32 1.442695, %v269_v10 }
 0x34e   :  { %v256_v9 = vpop.xlane.xlu1 %255 }
 0x34f   :  { %v272_v11 = vsub.f32 %v225_v44, %v256_v9  ;;  %v279_v12 = vmul.f32 1.442695, %v270_v8 }
 0x350   :  { %v253_v13 = vpop.xlane.xlu0 %252 }
 0x351   :  { %v283_v15 = vmul.f32 1.442695, %v272_v11  ;;  %v271_v16 = vsub.f32 %v222_v47, %v253_v13 }
 0x353   :  { %2066 = vpow2.f32 %v283_v15  ;;  %v281_v18 = vmul.f32 1.442695, %v271_v16 }
 0x354   :  { %2068 = vpow2.f32 %v279_v12  ;;  %v259_v19 = vpop.xlane.xlu0 %258  ;;  %v262_v20 = vpop.xlane.xlu1 %261 }
 0x355   :  { %2070 = vpow2.f32 %v281_v18  ;;  %v273_v21 = vsub.f32 %v230_v54, %v259_v19  ;;  %v274_v14 = vsub.f32 %v233_v60, %v262_v20 }
 0x356   :  { %2072 = vpow2.f32 %v277_v17 }
 0x357   :  { %v285_v26 = vmul.f32 1.442695, %v273_v21  ;;  %v287_v31 = vmul.f32 1.442695, %v274_v14 }
 0x358   :  { %v265_v22 = vpop.xlane.xlu0 %264  ;;  %v268_v23 = vpop.xlane.xlu1 %267 }
 0x359   :  { %v275_v24 = vsub.f32 %v238_v61, %v265_v22  ;;  %v276_v25 = vsub.f32 %v241_v62, %v268_v23 }
 0x35b   :  { %v289_v29 = vmul.f32 1.442695, %v275_v24  ;;  %v291_v30 = vmul.f32 1.442695, %v276_v25  ;;  %v2038_v25 = vld [vmem:[%s2720_s4] sm:$0xff]  }
 0x35c   :  { %v338_v32 = vpop.permute.xlu0 %337  ;;  %v340_v36 = vpop.permute.xlu1 %339 }
 0x35d   :  { %v2348_v33 = vpop.eup %2066  ;;  %2074 = vpow2.f32 %v289_v29  ;;  %1814 = vmatprep.subr.bf16.mxu0 %v338_v32 }
 0x35e   :  { %v2069_v34 = vpop.eup %2068  ;;  %2076 = vpow2.f32 %v291_v30  ;;  %1815 = vmatpush3.bf16.msra.mxu0 %v338_v32  ;;  %v302_v37 = vsel %vm244_vm3, %v2348_v33, 0.0 }
 0x35f   :  { %v2071_v40 = vpop.eup %2070  ;;  %2078 = vpow2.f32 %v285_v26  ;;  %303 = vadd.xlane.f32.xlu1 %v302_v37  ;;  %1816 = vmatprep.subr.bf16.mxu0 %v340_v36  ;;  %v296_v44 = vsel %vm244_vm3, %v2069_v34, 0.0  ;;  %v2039_v26 = vld [vmem:[%s2720_s4 + $0x8] sm:$0xff]  }
 0x360   :  { %2080 = vpow2.f32 %v287_v31  ;;  %v299_v41 = vsel %vm244_vm3, %v2071_v40, 0.0  ;;  %v2073_v43 = vpop.eup %2072 }
 0x361   :  { %300 = vadd.xlane.f32.xlu0 %v299_v41  ;;  %v293_v45 = vsel %vm244_vm3, %v2073_v43, 0.0 }
 0x362   :  { %1817 = vmatpush3.bf16.msra.mxu0 %v340_v36 }
 0x363   :  { %297 = vadd.xlane.f32.xlu1 %v296_v44 }
 0x365   :  { %294 = vadd.xlane.f32.xlu0 %v293_v45 }
 0x367   :  { %v2075_v46 = vpop.eup %2074 }
 0x368   :  { %v2077_v47 = vpop.eup %2076  ;;  %v311_v48 = vsel %vm244_vm3, %v2075_v46, 0.0 }
 0x369   :  { %v2079_v50 = vpop.eup %2078  ;;  %312 = vadd.xlane.f32.xlu0 %v311_v48  ;;  %v314_v51 = vsel %vm244_vm3, %v2077_v47, 0.0 }
 0x36a   :  { %v2081_v52 = vpop.eup %2080  ;;  %315 = vadd.xlane.f32.xlu1 %v314_v51  ;;  %v305_v54 = vsel %vm244_vm3, %v2079_v50, 0.0 }
 0x36b   :  { %v308_v55 = vsel %vm244_vm3, %v2081_v52, 0.0 }
 0x36d   :  { %306 = vadd.xlane.f32.xlu0 %v305_v54 }
 0x36e   :  { %309 = vadd.xlane.f32.xlu1 %v308_v55 }
 0x37f   :  { %341 = vrot.lane.b32.xlu1 %v2267_v28, %s2160_s1 }
 0x383   :  { %343 = vrot.lane.b32.xlu0 %v2265_v27, %s2160_s1 }
 0x3ec   :  { %v304_v56 = vpop.xlane.xlu1 %303 }
 0x3ee   :  { %v301_v59 = vpop.xlane.xlu0 %300 }
 0x3f0   :  { %v298_v60 = vpop.xlane.xlu1 %297 }
 0x3f1   :  { %2082 = vrcp.f32 %v298_v60 }
 0x3f2   :  { %v295_v61 = vpop.xlane.xlu0 %294 }
 0x3f3   :  { %2084 = vrcp.f32 %v295_v61 }
 0x3f4   :  { %2086 = vrcp.f32 %v301_v59 }
 0x3f5   :  { %2088 = vrcp.f32 %v304_v56 }
 0x3f6   :  { %v313_v62 = vpop.xlane.xlu0 %312 }
 0x3f7   :  { %v316_v63 = vpop.xlane.xlu1 %315  ;;  %2090 = vrcp.f32 %v313_v62 }
 0x3fa   :  { %v307_v1 = vpop.xlane.xlu0 %306 }
 0x3fb   :  { %v2083_v2 = vpop.eup %2082  ;;  %2092 = vrcp.f32 %v307_v1  ;;  %v310_v5 = vpop.xlane.xlu1 %309  ;;  %v463_v1 = vlaneseq }
 0x3fc   :  { %2094 = vrcp.f32 %v310_v5  ;;  %v326_v27 = vmul.f32 %v2083_v2, %v2069_v34 }
 0x3fd   :  { %v2085_v28 = vpop.eup %2084  ;;  %2096 = vrcp.f32 %v316_v63  ;;  %v2391_v2 = vshrl.u32 %v463_v1, 7 }
 0x3fe   :  { %v325_v6 = vmul.f32 %v2085_v28, %v2073_v43  ;;  %v2087_v7 = vpop.eup %2086  ;;  %v344_v11 = vpop.permute.xlu0 %343  ;;  %v2397_v28 = vld [vmem:[%s2721_s8] sm:$0xff] }
 0x3ff   :  { %v342_v8 = vpop.permute.xlu1 %341  ;;  %v2089_v10 = vpop.eup %2088  ;;  %v327_v12 = vmul.f32 %v2087_v7, %v2071_v40  ;;  %v465_v5 = vsub.s32 0, %v2391_v2 }
 0x400   :  { %1818 = vmatprep.subr.bf16.mxu0 %v342_v8  ;;  %v333_v9 = vpack.c.bf16 %v326_v27, %v325_v6  ;;  %v328_v15 = vmul.f32 %v2089_v10, %v2348_v33 }
 0x401   :  { %1819 = vmatpush3.bf16.msra.mxu0 %v342_v8  ;;  %v2091_v13 = vpop.eup %2090  ;;  %v466_v6 = vrot.slane %v2397_v28, %v465_v5 }
 0x402   :  { %1820 = vmatprep.subr.bf16.mxu0 %v344_v11  ;;  %1822 = vmatprep.mubr.msk.bf16.mxu0 %vm244_vm3, %v333_v9  ;;  %v334_v18 = vpack.c.bf16 %v328_v15, %v327_v12  ;;  %v331_v22 = vmul.f32 %v2091_v13, %v2075_v46 }
 0x405   :  { %v2093_v16 = vpop.eup %2092  ;;  %1821 = vmatpush3.bf16.msra.mxu0 %v344_v11 }
 0x406   :  { %v2095_v17 = vpop.eup %2094  ;;  %v329_v19 = vmul.f32 %v2093_v16, %v2079_v50  ;;  %1830 = vmatprep.subr.bf16.mxu0 %v2154_v0 }
 0x407   :  { %v2097_v20 = vpop.eup %2096  ;;  %v330_v21 = vmul.f32 %v2095_v17, %v2081_v52 }
 0x408   :  { %1823 = vmatmul.mubr.msk.bf16.vlgmr.msra.gmra.mrb[4].mxu0 %vm244_vm3, %v334_v18  ;;  %v332_v23 = vmul.f32 %v2097_v20, %v2077_v47 }
 0x409   :  { %v335_v14 = vpack.c.bf16 %v330_v21, %v329_v19  ;;  %1831 = vmatpush3.bf16.msra.mxu0 %v2038_v25  ;;  %v2041_v25 = vld [vmem:[%s2722_s5 + $0x8] sm:$0xff]  }
 0x40a   :  { %v336_v24 = vpack.c.bf16 %v332_v23, %v331_v22  ;;  %1832 = vmatprep.subr.bf16.mxu0 %v2154_v0 }
 0x40b   :  { %1826 = vmatprep.mubr.msk.bf16.mxu0 %vm244_vm3, %v335_v14 }
 0x40d   :  { %1833 = vmatpush3.bf16.msra.mxu0 %v2039_v26 }
 0x40e   :  { %1838 = vmatprep.subr.bf16.mxu0 %v2154_v0 }
 0x410   :  { %1827 = vmatmul.mubr.msk.bf16.gmra.mrb[8].mxu0 %vm244_vm3, %v336_v24 }
 0x411   :  { %1834 = vmatprep.mubr.msk.bf16.mxu0 %vm2155_vm0, %v2154_v0 }
 0x4db   :  { %v1824_v29 = vpop.f32.mrb[4].mxu0 }
 0x4dc   :  { %v395_v30 = vpop.f32.mrb[5].mxu0 }
 0x4dd   :  { %v1825_v31 = vpop.f32.mrb[6].mxu0 }
 0x4de   :  { %v1991_v32 = vpack.i.bf16 %v1825_v31, %v1824_v29  ;;  %v398_v33 = vpop.f32.mrb[7].mxu0 }
 0x4e0   :  { %1992 = vrot.lane.b32.xlu1 %v1991_v32, %s2161_s15 }
 0x4e3   :  { %v1828_v34 = vpop.f32.mrb[8].mxu0 }
 0x4e4   :  { %v411_v36 = vpop.f32.mrb[9].mxu0 }
 0x4e5   :  { %v1829_v37 = vpop.f32.mrb[10].mxu0 }
 0x4e6   :  { %v2001_v40 = vpack.i.bf16 %v1829_v37, %v1828_v34  ;;  %v414_v41 = vpop.f32.mrb[11].mxu0  ;;  %v554_v34 = vsub.s32 1, %v2391_v2 }
 0x4e7   :  { %v1996_v43 = vpack.i.bf16 %v414_v41, %v411_v36  ;;  %v560_v41 = vsub.s32 2, %v2391_v2 }
 0x4e8   :  { %2002 = vrot.lane.b32.xlu1 %v2001_v40, %s2162_s16  ;;  %v555_v37 = vrot.slane %v2397_v28, %v554_v34 }
 0x4e9   :  { %1997 = vrot.lane.b32.xlu0 %v1996_v43, %s2163_s17 }
 0x552   :  { %v1993_v44 = vpop.permute.xlu1 %1992 }
 0x553   :  { %v1995_v45 = vunpack.i.h.bf16 %v1993_v44  ;;  %v1994_v46 = vunpack.i.l.bf16 %v1993_v44 }
 0x555   :  { %v450_v52 = vsel %vm154_vm2, %v395_v30, %v1994_v46  ;;  %v451_v54 = vsel %vm154_vm2, %v398_v33, %v1995_v45  ;;  %v561_v46 = vrot.slane %v2397_v28, %v560_v41 }
 0x55a   :  { %v2003_v47 = vpop.permute.xlu1 %2002 }
 0x55b   :  { %v1998_v48 = vpop.permute.xlu0 %1997  ;;  %v2005_v55 = vunpack.i.h.bf16 %v2003_v47  ;;  %v2004_v56 = vunpack.i.l.bf16 %v2003_v47 }
 0x55c   :  { %v2000_v50 = vunpack.i.h.bf16 %v1998_v48  ;;  %v1999_v51 = vunpack.i.l.bf16 %v1998_v48 }
 0x55e   :  { %v454_v59 = vsel %vm452_vm4, %v451_v54, %v2000_v50  ;;  %v453_v60 = vsel %vm452_vm4, %v450_v52, %v1999_v51  ;;  %v2042_v52 = vld [vmem:[%s2723_s7] sm:$0xff]   ;;  %v2043_v54 = vld [vmem:[%s2723_s7 + $0x8] sm:$0xff]  }
 0x55f   :  { %v457_v61 = vsel %vm455_vm5, %v454_v59, %v2005_v55  ;;  %v456_v62 = vsel %vm455_vm5, %v453_v60, %v2004_v56  ;;  %1847 = vmatpush3.bf16.msra.mxu1 %v2042_v52  ;;  %v2044_v55 = vld [vmem:[%s2723_s7 + $0x10] sm:$0xff]   ;;  %v2045_v56 = vld [vmem:[%s2723_s7 + $0x18] sm:$0xff]   ;;  %v2046_v59 = vld [vmem:[%s2723_s7 + $0x20] sm:$0xff]  }
 0x560   :  { %v458_v63 = vpack.c.bf16 %v457_v61, %v456_v62  ;;  %1848 = vmatprep.subr.bf16.mxu1 %v2154_v0  ;;  %v2047_v60 = vld [vmem:[%s2723_s7 + $0x28] sm:$0xff]   ;;  %v2048_v61 = vld [vmem:[%s2723_s7 + $0x30] sm:$0xff]   ;;  %v2049_v62 = vld [vmem:[%s2723_s7 + $0x38] sm:$0xff]  }
 0x562   :  { %1835 = vmatmul.mubr.msk.bf16.vlgmr.msra.gmra.mrb[12].mxu0 %vm73_vm1, %v458_v63  ;;  %v1644_v63 = vld [vmem:[%s2724_s6] ss:$0 sm:$0xff] }
 0x563   :  { %1842 = vmatprep.mubr.msk.bf16.mxu0 %vm2155_vm0, %v2154_v0  ;;  %1849 = vmatpush3.bf16.msra.mxu1 %v2043_v54 }
 0x564   :  { %1850 = vmatprep.subr.bf16.mxu1 %v2154_v0 }
 0x567   :  { %1851 = vmatpush3.bf16.msra.mxu1 %v2044_v55 }
 0x568   :  { %1852 = vmatprep.subr.bf16.mxu1 %v2154_v0 }
 0x56b   :  { %1853 = vmatpush3.bf16.msra.mxu1 %v2045_v56 }
 0x56c   :  { %1854 = vmatprep.subr.bf16.mxu1 %v2154_v0 }
 0x56f   :  { %1855 = vmatpush3.bf16.msra.mxu1 %v2046_v59 }
 0x570   :  { %1856 = vmatprep.subr.bf16.mxu1 %v2154_v0 }
 0x573   :  { %1857 = vmatpush3.bf16.msra.mxu1 %v2047_v60 }
 0x574   :  { %1858 = vmatprep.subr.bf16.mxu1 %v2154_v0 }
 0x577   :  { %1859 = vmatpush3.bf16.msra.mxu1 %v2048_v61 }
 0x578   :  { %1860 = vmatprep.subr.bf16.mxu1 %v2154_v0 }
 0x57b   :  { %1861 = vmatpush3.bf16.msra.mxu1 %v2049_v62  ;;  %v2051_v62 = vld [vmem:[%s2716_s2 + $0x18] sm:$0xff]  }
 0x635   :  { %v516_v27 = vpop.f32.mrb[12].mxu0 }
 0x636   :  { %v517_v7 = vadd.f32 %v516_v27, %v466_v6  ;;  %v1836_v8 = vpop.f32.mrb[13].mxu0 }
 0x637   :  { %v519_v9 = vpop.f32.mrb[14].mxu0 }
 0x638   :  { %v520_v10 = vadd.f32 %v519_v9, %v466_v6  ;;  %v1837_v11 = vpop.f32.mrb[15].mxu0  ;;  %v523_v12 = vadd.f32 %v517_v7, %v2236_v3 }
 0x63a   :  { %v525_v13 = vsel %vm73_vm1, %v523_v12, 0.0  ;;  %v524_v15 = vadd.f32 %v520_v10, %v2241_v4  ;;  %v2040_v4 = vld [vmem:[%s2722_s5] sm:$0xff]  }
 0x63b   :  { %526 = vadd.xlane.f32.xlu0 %v525_v13  ;;  %1839 = vmatpush3.bf16.msra.mxu0 %v2040_v4 }
 0x63c   :  { %v528_v16 = vsel %vm73_vm1, %v524_v15, 0.0  ;;  %1840 = vmatprep.subr.bf16.mxu0 %v2154_v0 }
 0x63d   :  { %529 = vadd.xlane.f32.xlu1 %v528_v16 }
 0x63f   :  { %1841 = vmatpush3.bf16.msra.mxu0 %v2041_v25 }
 0x640   :  { %1866 = vmatprep.subr.bf16.mxu0 %v2154_v0 }
 0x6c8   :  { %v527_v17 = vpop.xlane.xlu0 %526 }
 0x6c9   :  { %v532_v18 = vmul.f32 0.03125, %v527_v17 }
 0x6ca   :  { %v530_v19 = vpop.xlane.xlu1 %529 }
 0x6cb   :  { %v534_v20 = vsub.f32 %v523_v12, %v532_v18  ;;  %v533_v21 = vmul.f32 0.03125, %v530_v19 }
 0x6cd   :  { %v535_v14 = vsub.f32 %v524_v15, %v533_v21  ;;  %v536_v22 = vmul.f32 %v534_v20, %v534_v20 }
 0x6cf   :  { %v538_v23 = vsel %vm73_vm1, %v536_v22, 0.0  ;;  %v537_v24 = vmul.f32 %v535_v14, %v535_v14 }
 0x6d0   :  { %539 = vadd.xlane.f32.xlu0 %v538_v23 }
 0x6d1   :  { %v541_v3 = vsel %vm73_vm1, %v537_v24, 0.0 }
 0x6d4   :  { %542 = vadd.xlane.f32.xlu0 %v541_v3 }
 0x75d   :  { %v540_v26 = vpop.xlane.xlu0 %539 }
 0x75e   :  { %v544_v29 = vmul.f32 0.03125, %v540_v26 }
 0x760   :  { %v546_v30 = vadd.f32 1e-05, %v544_v29  ;;  %v669_v29 = vsub.s32 3, %v2391_v2 }
 0x761   :  { %v543_v31 = vpop.xlane.xlu0 %542 }
 0x762   :  { %2098 = vrsqrt.f32 %v546_v30  ;;  %v545_v32 = vmul.f32 0.03125, %v543_v31  ;;  %v670_v30 = vrot.slane %v2397_v28, %v669_v29 }
 0x764   :  { %v547_v33 = vadd.f32 1e-05, %v545_v32 }
 0x766   :  { %2100 = vrsqrt.f32 %v547_v33 }
 0x76c   :  { %v2099_v36 = vpop.eup %2098 }
 0x76d   :  { %v550_v40 = vmul.f32 %v2099_v36, %v534_v20 }
 0x76f   :  { %v556_v44 = vmul.f32 %v555_v37, %v550_v40 }
 0x770   :  { %v2101_v43 = vpop.eup %2100 }
 0x771   :  { %v551_v45 = vmul.f32 %v2101_v43, %v535_v14  ;;  %v2424_v48 = vadd.f32 %v561_v46, %v556_v44 }
 0x773   :  { %v557_v47 = vmul.f32 %v555_v37, %v551_v45 }
 0x775   :  { %v2426_v50 = vadd.f32 %v561_v46, %v557_v47 }
 0x777   :  { %v564_v51 = vpack.c.bf16 %v2426_v50, %v2424_v48 }
 0x779   :  { %1843 = vmatmul.mubr.msk.bf16.vlgmr.msra.gmra.mrb[16].mxu0 %vm73_vm1, %v564_v51 }
 0x77a   :  { %1870 = vmatprep.mubr.msk.bf16.mxu0 %vm2155_vm0, %v2154_v0 }
 0x84c   :  { %v625_v1 = vpop.f32.mrb[16].mxu0 }
 0x84d   :  { %v626_v6 = vadd.f32 %v1644_v63, %v625_v1  ;;  %v1844_v27 = vpop.f32.mrb[17].mxu0 }
 0x84e   :  { %v628_v7 = vpop.f32.mrb[18].mxu0 }
 0x84f   :  { %v634_v8 = vmul.f32 0.044715, %v626_v6  ;;  %v629_v9 = vadd.f32 %v1644_v63, %v628_v7  ;;  %v1845_v10 = vpop.f32.mrb[19].mxu0  ;;  %v632_v23 = vmul.f32 0.5, %v626_v6 }
 0x850   :  { %v796_v10 = vsub.s32 5, %v2391_v2 }
 0x851   :  { %v636_v11 = vmul.f32 %v634_v8, %v626_v6  ;;  %v635_v12 = vmul.f32 0.044715, %v629_v9  ;;  %v633_v24 = vmul.f32 0.5, %v629_v9 }
 0x853   :  { %v638_v13 = vmul.f32 %v636_v11, %v626_v6  ;;  %v637_v15 = vmul.f32 %v635_v12, %v629_v9 }
 0x855   :  { %v640_v16 = vadd.f32 %v638_v13, %v626_v6  ;;  %v639_v17 = vmul.f32 %v637_v15, %v629_v9  ;;  %v797_v15 = vrot.slane %v2397_v28, %v796_v10 }
 0x857   :  { %v642_v18 = vmul.f32 0.7978846, %v640_v16  ;;  %v641_v19 = vadd.f32 %v639_v17, %v629_v9  ;;  %v790_v9 = vsub.s32 4, %v2391_v2 }
 0x859   :  { %2102 = vtanh.f32 %v642_v18  ;;  %v643_v20 = vmul.f32 0.7978846, %v641_v19  ;;  %v791_v11 = vrot.slane %v2397_v28, %v790_v9 }
 0x85b   :  { %2104 = vtanh.f32 %v643_v20 }
 0x863   :  { %v2103_v21 = vpop.eup %2102 }
 0x864   :  { %v646_v14 = vadd.f32 1.0, %v2103_v21 }
 0x865   :  { %v2105_v22 = vpop.eup %2104 }
 0x866   :  { %v647_v3 = vadd.f32 1.0, %v2105_v22  ;;  %v648_v4 = vmul.f32 %v646_v14, %v632_v23  ;;  %v1662_v14 = vld [vmem:[%s2718_s3 + $0x1] ss:$0 sm:$0xff] }
 0x868   :  { %v649_v25 = vmul.f32 %v647_v3, %v633_v24 }
 0x86a   :  { %v650_v26 = vpack.c.bf16 %v649_v25, %v648_v4 }
 0x86c   :  { %1863 = vmatmul.mubr.bf16.vlgmr.msra.gmra.mrb[8].mxu1 %v650_v26 }
 0x93f   :  { %v753_v31 = vpop.f32.mrb[8].mxu1 }
 0x940   :  { %v754_v32 = vadd.f32 %v753_v31, %v670_v30  ;;  %v1864_v33 = vpop.f32.mrb[9].mxu1 }
 0x941   :  { %v756_v36 = vpop.f32.mrb[10].mxu1 }
 0x942   :  { %v757_v37 = vadd.f32 %v756_v36, %v670_v30  ;;  %v1865_v40 = vpop.f32.mrb[11].mxu1  ;;  %v760_v43 = vadd.f32 %v754_v32, %v2424_v48 }
 0x944   :  { %v762_v44 = vsel %vm73_vm1, %v760_v43, 0.0  ;;  %v761_v45 = vadd.f32 %v757_v37, %v2426_v50  ;;  %v2050_v50 = vld [vmem:[%s2716_s2 + $0x10] sm:$0xff]  }
 0x945   :  { %763 = vadd.xlane.f32.xlu1 %v762_v44  ;;  %1867 = vmatpush3.bf16.msra.mxu0 %v2050_v50 }
 0x946   :  { %v765_v46 = vsel %vm73_vm1, %v761_v45, 0.0  ;;  %1868 = vmatprep.subr.bf16.mxu0 %v2154_v0 }
 0x947   :  { %766 = vadd.xlane.f32.xlu0 %v765_v46 }
 0x949   :  { %1869 = vmatpush3.bf16.msra.mxu0 %v2051_v62 }
 0x9d2   :  { %v764_v47 = vpop.xlane.xlu1 %763 }
 0x9d3   :  { %v768_v51 = vmul.f32 0.03125, %v764_v47 }
 0x9d4   :  { %v767_v52 = vpop.xlane.xlu0 %766 }
 0x9d5   :  { %v770_v54 = vsub.f32 %v760_v43, %v768_v51  ;;  %v769_v55 = vmul.f32 0.03125, %v767_v52 }
 0x9d7   :  { %v771_v56 = vsub.f32 %v761_v45, %v769_v55  ;;  %v772_v59 = vmul.f32 %v770_v54, %v770_v54 }
 0x9d9   :  { %v774_v60 = vsel %vm73_vm1, %v772_v59, 0.0  ;;  %v773_v61 = vmul.f32 %v771_v56, %v771_v56 }
 0x9da   :  { %775 = vadd.xlane.f32.xlu1 %v774_v60 }
 0x9db   :  { %v777_v48 = vsel %vm73_vm1, %v773_v61, 0.0 }
 0x9dc   :  { %778 = vadd.xlane.f32.xlu0 %v777_v48 }
 0xa67   :  { %v776_v63 = vpop.xlane.xlu1 %775 }
 0xa68   :  { %v780_v1 = vmul.f32 0.03125, %v776_v63 }
 0xa69   :  { %v779_v6 = vpop.xlane.xlu0 %778 }
 0xa6a   :  { %v782_v27 = vadd.f32 1e-05, %v780_v1  ;;  %v781_v7 = vmul.f32 0.03125, %v779_v6 }
 0xa6c   :  { %2106 = vrsqrt.f32 %v782_v27  ;;  %v783_v8 = vadd.f32 1e-05, %v781_v7 }
 0xa6e   :  { %2108 = vrsqrt.f32 %v783_v8 }
 0xa76   :  { %v2107_v12 = vpop.eup %2106 }
 0xa77   :  { %v786_v13 = vmul.f32 %v2107_v12, %v770_v54 }
 0xa78   :  { %v2109_v16 = vpop.eup %2108 }
 0xa79   :  { %v792_v17 = vmul.f32 %v791_v11, %v786_v13  ;;  %v787_v18 = vmul.f32 %v2109_v16, %v771_v56 }
 0xa7b   :  { %v793_v19 = vmul.f32 %v791_v11, %v787_v18  ;;  %v2492_v20 = vadd.f32 %v797_v15, %v792_v17 }
 0xa7d   :  { %v2494_v21 = vadd.f32 %v797_v15, %v793_v19  ;;  %800 = vst.msk [vmem:[%s2725_s10] sm:$0xff] %vm73_vm1, %v2492_v20 }
 0xa7f   :  { %801 = vst.msk [vmem:[%s2725_s10 + $0x8] sm:$0xff] %vm73_vm1, %v2494_v21  ;;  %v802_v28 = vpack.c.bf16 %v2494_v21, %v2492_v20 }
 0xa81   :  { %1871 = vmatmul.mubr.msk.bf16.vlgmr.msra.gmra.mrb[20].mxu0 %vm73_vm1, %v802_v28 }
 0xb54   :  { %v867_v22 = vpop.f32.mrb[20].mxu0 }
 0xb55   :  { %v1872_v23 = vpop.f32.mrb[21].mxu0  ;;  %v868_v3 = vadd.f32 %v1662_v14, %v867_v22 }
 0xb56   :  { %v870_v24 = vpop.f32.mrb[22].mxu0 }
 0xb57   :  { %v871_v4 = vadd.f32 %v1662_v14, %v870_v24  ;;  %v1873_v25 = vpop.f32.mrb[23].mxu0 }
 0xb59   :  { %v2011_v26 = vpack.i.bf16 %v871_v4, %v868_v3  ;;  %v2512_v30 = vpack.c.bf16 %v871_v4, %v868_v3 }
 0xb5b   :  { %2012 = vrot.lane.b32.xlu0 %v2011_v26, %s2158_s28  ;;  %2007 = vrot.lane.b32.xlu1 %v2011_v26, %s2157_s27 }
 0xb5c   :  { %1882 = vmatprep.mubr.msk.bf16.mxu0 %vm154_vm2, %v2512_v30 }
 0xb5f   :  { %2017 = vrot.lane.b32.xlu1 %v2011_v26, %s2156_s0 }
 0xb63   :  { %902 = vrot.lane.b32.xlu1 %v2512_v30, %s2159_s29 }
 0xbcd   :  { %v2013_v31 = vpop.permute.xlu0 %2012  ;;  %v2008_v32 = vpop.permute.xlu1 %2007 }
 0xbce   :  { %v2015_v33 = vunpack.i.h.bf16 %v2013_v31  ;;  %v2014_v36 = vunpack.i.l.bf16 %v2013_v31  ;;  %v2010_v37 = vunpack.i.h.bf16 %v2008_v32  ;;  %v2009_v40 = vunpack.i.l.bf16 %v2008_v32 }
 0xbd0   :  { %v2521_v43 = vpack.c.bf16 %v2015_v33, %v2014_v36  ;;  %v895_v44 = vpack.c.bf16 %v2010_v37, %v2009_v40 }
 0xbd1   :  { %v2018_v45 = vpop.permute.xlu1 %2017 }
 0xbd2   :  { %v2020_v46 = vunpack.i.h.bf16 %v2018_v45  ;;  %v2019_v47 = vunpack.i.l.bf16 %v2018_v45  ;;  %904 = vrot.lane.b32.xlu0 %v895_v44, %s2159_s29  ;;  %906 = vrot.lane.b32.xlu1 %v2521_v43, %s2159_s29 }
 0xbd4   :  { %v2526_v51 = vpack.c.bf16 %v2020_v46, %v2019_v47 }
 0xbd5   :  { %v903_v52 = vpop.permute.xlu1 %902 }
 0xbd6   :  { %v923_v54 = vsel %vm154_vm2, %v903_v52, 0  ;;  %908 = vrot.lane.b32.xlu0 %v2526_v51, %s2159_s29  ;;  %1962 = vmatprep.subr.msk.bf16.mxu0 %vm154_vm2, %v903_v52 }
 0xbd7   :  { %1875 = vmatpush3.bf16.xpose.msra.mxu0 %v923_v54 }
 0xc44   :  { %v905_v55 = vpop.permute.xlu0 %904  ;;  %v907_v59 = vpop.permute.xlu1 %906 }
 0xc45   :  { %v926_v56 = vsel %vm154_vm2, %v905_v55, 0  ;;  %1963 = vmatprep.subr.msk.bf16.mxu0 %vm154_vm2, %v905_v55  ;;  %v929_v60 = vsel %vm154_vm2, %v907_v59, 0 }
 0xc46   :  { %1877 = vmatpush3.bf16.xpose.msra.mxu0 %v926_v56 }
 0xc47   :  { %1964 = vmatprep.subr.msk.bf16.mxu0 %vm154_vm2, %v907_v59 }
 0xc48   :  { %v909_v61 = vpop.permute.xlu0 %908 }
 0xc49   :  { %v932_v48 = vsel %vm154_vm2, %v909_v61, 0 }
 0xc4e   :  { %1879 = vmatpush3.bf16.xpose.msra.mxu0 %v929_v60 }
 0xc4f   :  { %1965 = vmatprep.subr.msk.bf16.mxu0 %vm154_vm2, %v909_v61 }
 0xc56   :  { %1881 = vmatpush3.bf16.xpose.msra.mxu0 %v932_v48 }
 0xc5d   :  { %1883 = vmatmul.mubr.msk.bf16.vlgmr.msra.gmra.mrb[24].mxu0 %vm154_vm2, %v895_v44 }
 0xc5e   :  { %1886 = vmatprep.mubr.msk.bf16.mxu0 %vm154_vm2, %v2521_v43 }
 0xc65   :  { %1887 = vmatmul.mubr.msk.bf16.gmra.mrb[28].mxu0 %vm154_vm2, %v2526_v51 }
 0xd30   :  { %v1884_v50 = vpop.f32.mrb[24].mxu0 }
 0xd31   :  { %v977_v62 = vadd.f32 %v1884_v50, %v2307_v42  ;;  %v968_v63 = vpop.f32.mrb[25].mxu0 }
 0xd32   :  { %v969_v1 = vadd.f32 %v968_v63, %v2291_v35  ;;  %v1885_v6 = vpop.f32.mrb[26].mxu0 }
 0xd33   :  { %v971_v27 = vpop.f32.mrb[27].mxu0  ;;  %v1005_v7 = vsel %vm244_vm3, %v977_v62, -inf  ;;  %v980_v8 = vadd.f32 %v1885_v6, %v2296_v38 }
 0xd34   :  { %v972_v11 = vadd.f32 %v971_v27, %v2301_v39  ;;  %1006 = vmax.xlane.f32.xlu0 %v1005_v7  ;;  %v999_v12 = vsel %vm244_vm3, %v969_v1, -inf }
 0xd35   :  { %1000 = vmax.xlane.f32.xlu1 %v999_v12  ;;  %v1008_v42 = vsel %vm244_vm3, %v980_v8, -inf }
 0xd36   :  { %v1002_v13 = vsel %vm244_vm3, %v972_v11, -inf }
 0xd38   :  { %v1888_v15 = vpop.f32.mrb[28].mxu0  ;;  %1003 = vmax.xlane.f32.xlu0 %v1002_v13 }
 0xd39   :  { %v984_v16 = vpop.f32.mrb[29].mxu0  ;;  %1009 = vmax.xlane.f32.xlu1 %v1008_v42  ;;  %v993_v38 = vadd.f32 %v1888_v15, %v2330_v57 }
 0xd3a   :  { %v985_v35 = vadd.f32 %v984_v16, %v2317_v49  ;;  %v1889_v17 = vpop.f32.mrb[30].mxu0 }
 0xd3b   :  { %v987_v18 = vpop.f32.mrb[31].mxu0  ;;  %v996_v28 = vadd.f32 %v1889_v17, %v2335_v58  ;;  %v1017_v22 = vsel %vm244_vm3, %v993_v38, -inf }
 0xd3c   :  { %v988_v39 = vadd.f32 %v987_v18, %v2323_v53  ;;  %v1011_v19 = vsel %vm244_vm3, %v985_v35, -inf }
 0xd3d   :  { %1012 = vmax.xlane.f32.xlu0 %v1011_v19  ;;  %v1020_v23 = vsel %vm244_vm3, %v996_v28, -inf }
 0xd3e   :  { %v1014_v14 = vsel %vm244_vm3, %v988_v39, -inf }
 0xd3f   :  { %1015 = vmax.xlane.f32.xlu1 %v1014_v14 }
 0xd41   :  { %1018 = vmax.xlane.f32.xlu0 %v1017_v22 }
 0xd43   :  { %1021 = vmax.xlane.f32.xlu1 %v1020_v23 }
 0xd54   :  { %1093 = vrot.lane.b32.xlu1 %v895_v44, %s2160_s1 }
 0xd57   :  { %1091 = vrot.lane.b32.xlu0 %v2512_v30, %s2160_s1 }
 0xdc1   :  { %v1007_v49 = vpop.xlane.xlu0 %1006 }
 0xdc2   :  { %v1025_v53 = vsub.f32 %v977_v62, %v1007_v49  ;;  %v1001_v57 = vpop.xlane.xlu1 %1000 }
 0xdc3   :  { %v1023_v24 = vsub.f32 %v969_v1, %v1001_v57 }
 0xdc4   :  { %v1035_v3 = vmul.f32 1.442695, %v1025_v53 }
 0xdc5   :  { %v1031_v58 = vmul.f32 1.442695, %v1023_v24  ;;  %v1004_v4 = vpop.xlane.xlu0 %1003 }
 0xdc6   :  { %2110 = vpow2.f32 %v1035_v3  ;;  %v1024_v25 = vsub.f32 %v972_v11, %v1004_v4  ;;  %v1010_v26 = vpop.xlane.xlu1 %1009 }
 0xdc7   :  { %v1026_v31 = vsub.f32 %v980_v8, %v1010_v26  ;;  %2112 = vpow2.f32 %v1031_v58 }
 0xdc8   :  { %v1033_v32 = vmul.f32 1.442695, %v1024_v25 }
 0xdc9   :  { %v1037_v33 = vmul.f32 1.442695, %v1026_v31 }
 0xdca   :  { %v1013_v36 = vpop.xlane.xlu0 %1012 }
 0xdcb   :  { %2114 = vpow2.f32 %v1037_v33  ;;  %v1027_v37 = vsub.f32 %v985_v35, %v1013_v36 }
 0xdcc   :  { %v1016_v40 = vpop.xlane.xlu1 %1015  ;;  %2116 = vpow2.f32 %v1033_v32 }
 0xdcd   :  { %v1028_v44 = vsub.f32 %v988_v39, %v1016_v40  ;;  %v1039_v47 = vmul.f32 1.442695, %v1027_v37 }
 0xdce   :  { %v1019_v30 = vpop.xlane.xlu0 %1018 }
 0xdcf   :  { %v1029_v45 = vsub.f32 %v993_v38, %v1019_v30  ;;  %v1041_v61 = vmul.f32 1.442695, %v1028_v44 }
 0xdd0   :  { %v2562_v46 = vpop.eup %2110  ;;  %v1022_v52 = vpop.xlane.xlu1 %1021 }
 0xdd1   :  { %v1043_v54 = vmul.f32 1.442695, %v1029_v45  ;;  %v1030_v55 = vsub.f32 %v996_v28, %v1022_v52  ;;  %v1053_v56 = vsel %vm244_vm3, %v2562_v46, 0.0  ;;  %v2113_v59 = vpop.eup %2112 }
 0xdd2   :  { %1054 = vadd.xlane.f32.xlu0 %v1053_v56  ;;  %v1092_v60 = vpop.permute.xlu0 %1091  ;;  %v1047_v63 = vsel %vm244_vm3, %v2113_v59, 0.0 }
 0xdd3   :  { %2118 = vpow2.f32 %v1043_v54  ;;  %v1045_v48 = vmul.f32 1.442695, %v1030_v55  ;;  %1890 = vmatprep.subr.bf16.mxu0 %v1092_v60  ;;  %1950 = vmatprep.subr.bf16.mxu1 %v1092_v60 }
 0xdd4   :  { %2120 = vpow2.f32 %v1039_v47  ;;  %1891 = vmatpush3.bf16.msra.mxu0 %v1092_v60  ;;  %1954 = vmatpush3.bf16.msra.mxu1 %v1092_v60  ;;  %v1094_v50 = vpop.permute.xlu1 %1093  ;;  %v2053_v47 = vld [vmem:[%s2720_s4 + $0x18] sm:$0xff]  }
 0xdd5   :  { %v2115_v62 = vpop.eup %2114  ;;  %2122 = vpow2.f32 %v1045_v48  ;;  %1892 = vmatprep.subr.bf16.mxu0 %v1094_v50  ;;  %1951 = vmatprep.subr.bf16.mxu1 %v1094_v50 }
 0xdd6   :  { %1048 = vadd.xlane.f32.xlu0 %v1047_v63  ;;  %v1056_v1 = vsel %vm244_vm3, %v2115_v62, 0.0  ;;  %v2117_v6 = vpop.eup %2116  ;;  %2124 = vpow2.f32 %v1041_v61 }
 0xdd7   :  { %1057 = vadd.xlane.f32.xlu1 %v1056_v1  ;;  %v1050_v27 = vsel %vm244_vm3, %v2117_v6, 0.0 }
 0xdd8   :  { %1893 = vmatpush3.bf16.msra.mxu0 %v1094_v50  ;;  %1955 = vmatpush3.bf16.msra.mxu1 %v1094_v50 }
 0xddb   :  { %1051 = vadd.xlane.f32.xlu1 %v1050_v27 }
 0xddd   :  { %v2119_v7 = vpop.eup %2118 }
 0xdde   :  { %v2121_v8 = vpop.eup %2120  ;;  %v1065_v11 = vsel %vm244_vm3, %v2119_v7, 0.0 }
 0xddf   :  { %v2123_v12 = vpop.eup %2122  ;;  %1066 = vadd.xlane.f32.xlu0 %v1065_v11  ;;  %v1059_v42 = vsel %vm244_vm3, %v2121_v8, 0.0 }
 0xde0   :  { %v1068_v13 = vsel %vm244_vm3, %v2123_v12, 0.0  ;;  %v2125_v15 = vpop.eup %2124 }
 0xde1   :  { %1069 = vadd.xlane.f32.xlu1 %v1068_v13  ;;  %v1062_v16 = vsel %vm244_vm3, %v2125_v15, 0.0 }
 0xde3   :  { %1060 = vadd.xlane.f32.xlu0 %v1059_v42 }
 0xde5   :  { %1063 = vadd.xlane.f32.xlu1 %v1062_v16 }
 0xdf6   :  { %1095 = vrot.lane.b32.xlu1 %v2521_v43, %s2160_s1 }
 0xdf9   :  { %1097 = vrot.lane.b32.xlu0 %v2526_v51, %s2160_s1 }
 0xe5f   :  { %v1055_v35 = vpop.xlane.xlu0 %1054 }
 0xe63   :  { %v1049_v17 = vpop.xlane.xlu0 %1048 }
 0xe64   :  { %v1058_v18 = vpop.xlane.xlu1 %1057  ;;  %2126 = vrcp.f32 %v1049_v17 }
 0xe68   :  { %v1052_v38 = vpop.xlane.xlu1 %1051 }
 0xe69   :  { %2128 = vrcp.f32 %v1052_v38 }
 0xe6a   :  { %2130 = vrcp.f32 %v1058_v18 }
 0xe6b   :  { %2132 = vrcp.f32 %v1055_v35 }
 0xe6c   :  { %v1067_v39 = vpop.xlane.xlu0 %1066 }
 0xe6e   :  { %v1070_v19 = vpop.xlane.xlu1 %1069  ;;  %v2127_v14 = vpop.eup %2126 }
 0xe6f   :  { %2134 = vrcp.f32 %v1070_v19  ;;  %v1079_v23 = vmul.f32 %v2127_v14, %v2113_v59  ;;  %v2611_v19 = vld [vmem:[%s2721_s8 + $0x8] sm:$0xff] }
 0xe70   :  { %v1061_v28 = vpop.xlane.xlu0 %1060 }
 0xe71   :  { %2136 = vrcp.f32 %v1061_v28  ;;  %v1219_v28 = vrot.slane %v2611_v19, %v465_v5 }
 0xe72   :  { %2138 = vrcp.f32 %v1067_v39  ;;  %v1064_v22 = vpop.xlane.xlu1 %1063 }
 0xe73   :  { %v2129_v43 = vpop.eup %2128  ;;  %2140 = vrcp.f32 %v1064_v22 }
 0xe74   :  { %v1080_v51 = vmul.f32 %v2129_v43, %v2117_v6  ;;  %v2131_v49 = vpop.eup %2130  ;;  %v1098_v3 = vpop.permute.xlu0 %1097 }
 0xe75   :  { %v2133_v24 = vpop.eup %2132  ;;  %v1082_v58 = vmul.f32 %v2131_v49, %v2115_v62 }
 0xe76   :  { %v1096_v53 = vpop.permute.xlu1 %1095  ;;  %v1087_v57 = vpack.c.bf16 %v1080_v51, %v1079_v23  ;;  %v1081_v26 = vmul.f32 %v2133_v24, %v2562_v46  ;;  %v2052_v46 = vld [vmem:[%s2720_s4 + $0x10] sm:$0xff]  }
 0xe77   :  { %1894 = vmatprep.subr.bf16.mxu0 %v1096_v53  ;;  %1952 = vmatprep.subr.bf16.mxu1 %v1096_v53 }
 0xe78   :  { %1895 = vmatpush3.bf16.msra.mxu0 %v1096_v53  ;;  %1956 = vmatpush3.bf16.msra.mxu1 %v1096_v53  ;;  %v1088_v33 = vpack.c.bf16 %v1082_v58, %v1081_v26 }
 0xe79   :  { %1898 = vmatprep.mubr.msk.bf16.mxu0 %vm244_vm3, %v1087_v57  ;;  %1896 = vmatprep.subr.bf16.mxu0 %v1098_v3  ;;  %v2135_v4 = vpop.eup %2134 }
 0xe7a   :  { %1953 = vmatprep.subr.bf16.mxu1 %v1098_v3  ;;  %v1086_v36 = vmul.f32 %v2135_v4, %v2123_v12 }
 0xe7b   :  { %v2137_v25 = vpop.eup %2136 }
 0xe7c   :  { %v2139_v31 = vpop.eup %2138  ;;  %1897 = vmatpush3.bf16.msra.mxu0 %v1098_v3  ;;  %1957 = vmatpush3.bf16.msra.mxu1 %v1098_v3  ;;  %v1083_v37 = vmul.f32 %v2137_v25, %v2121_v8 }
 0xe7d   :  { %v2141_v32 = vpop.eup %2140  ;;  %1906 = vmatprep.subr.bf16.mxu1 %v2154_v0  ;;  %1914 = vmatprep.subr.bf16.mxu0 %v2154_v0  ;;  %v1085_v30 = vmul.f32 %v2139_v31, %v2119_v7 }
 0xe7e   :  { %v1084_v40 = vmul.f32 %v2141_v32, %v2125_v15 }
 0xe7f   :  { %1899 = vmatmul.mubr.msk.bf16.vlgmr.msra.gmra.mrb[32].mxu0 %vm244_vm3, %v1088_v33  ;;  %v1090_v45 = vpack.c.bf16 %v1086_v36, %v1085_v30 }
 0xe80   :  { %v1089_v44 = vpack.c.bf16 %v1084_v40, %v1083_v37  ;;  %1918 = vmatprep.mubr.msk.bf16.mxu0 %vm2155_vm0, %v2154_v0  ;;  %v2055_v37 = vld [vmem:[%s2722_s5 + $0x18] sm:$0xff]  }
 0xe82   :  { %1902 = vmatprep.mubr.msk.bf16.mxu1 %vm244_vm3, %v1089_v44 }
 0xe83   :  { %1903 = vmatmul.mubr.msk.bf16.vlgmr.msra.gmra.mrb[12].mxu1 %vm244_vm3, %v1090_v45 }
 0xe84   :  { %1910 = vmatprep.mubr.msk.bf16.mxu1 %vm2155_vm0, %v2154_v0  ;;  %1907 = vmatpush3.bf16.msra.mxu1 %v2052_v46 }
 0xe85   :  { %1908 = vmatprep.subr.bf16.mxu1 %v2154_v0 }
 0xe88   :  { %1909 = vmatpush3.bf16.msra.mxu1 %v2053_v47 }
 0xe89   :  { %1922 = vmatprep.subr.bf16.mxu1 %v2154_v0 }
 0xf52   :  { %v1900_v52 = vpop.f32.mrb[32].mxu0 }
 0xf53   :  { %v1149_v54 = vpop.f32.mrb[33].mxu0 }
 0xf54   :  { %v1901_v55 = vpop.f32.mrb[34].mxu0 }
 0xf55   :  { %v2021_v56 = vpack.i.bf16 %v1901_v55, %v1900_v52  ;;  %v1152_v59 = vpop.f32.mrb[35].mxu0 }
 0xf56   :  { %v1904_v60 = vpop.f32.mrb[12].mxu1 }
 0xf57   :  { %v1165_v61 = vpop.f32.mrb[13].mxu1  ;;  %2022 = vrot.lane.b32.xlu1 %v2021_v56, %s2161_s15 }
 0xf58   :  { %v1905_v48 = vpop.f32.mrb[14].mxu1 }
 0xf59   :  { %v2031_v50 = vpack.i.bf16 %v1905_v48, %v1904_v60  ;;  %v1168_v62 = vpop.f32.mrb[15].mxu1 }
 0xf5a   :  { %v2026_v63 = vpack.i.bf16 %v1168_v62, %v1165_v61  ;;  %v1313_v61 = vrot.slane %v2611_v19, %v560_v41  ;;  %v2057_v41 = vld [vmem:[%s2723_s7 + $0x48] sm:$0xff]  }
 0xf5b   :  { %2032 = vrot.lane.b32.xlu1 %v2031_v50, %s2162_s16 }
 0xf5c   :  { %2027 = vrot.lane.b32.xlu0 %v2026_v63, %s2163_s17 }
 0xfc9   :  { %v2023_v1 = vpop.permute.xlu1 %2022 }
 0xfca   :  { %v2025_v6 = vunpack.i.h.bf16 %v2023_v1  ;;  %v2024_v27 = vunpack.i.l.bf16 %v2023_v1  ;;  %v2058_v1 = vld [vmem:[%s2723_s7 + $0x50] sm:$0xff]  }
 0xfcc   :  { %v1204_v13 = vsel %vm154_vm2, %v1149_v54, %v2024_v27  ;;  %v1205_v15 = vsel %vm154_vm2, %v1152_v59, %v2025_v6  ;;  %v1307_v54 = vrot.slane %v2611_v19, %v554_v34  ;;  %v2056_v34 = vld [vmem:[%s2723_s7 + $0x40] sm:$0xff]   ;;  %v2059_v6 = vld [vmem:[%s2723_s7 + $0x58] sm:$0xff]  }
 0xfcd   :  { %v2033_v7 = vpop.permute.xlu1 %2032  ;;  %v2060_v27 = vld [vmem:[%s2723_s7 + $0x60] sm:$0xff]  }
 0xfce   :  { %v2028_v8 = vpop.permute.xlu0 %2027  ;;  %v2035_v42 = vunpack.i.h.bf16 %v2033_v7  ;;  %v2034_v16 = vunpack.i.l.bf16 %v2033_v7  ;;  %v2061_v7 = vld [vmem:[%s2723_s7 + $0x68] sm:$0xff]  }
 0xfcf   :  { %v2030_v11 = vunpack.i.h.bf16 %v2028_v8  ;;  %v2029_v12 = vunpack.i.l.bf16 %v2028_v8  ;;  %v2062_v8 = vld [vmem:[%s2723_s7 + $0x70] sm:$0xff]  }
 0xfd1   :  { %v1206_v35 = vsel %vm452_vm4, %v1204_v13, %v2029_v12  ;;  %v1207_v17 = vsel %vm452_vm4, %v1205_v15, %v2030_v11  ;;  %v2063_v11 = vld [vmem:[%s2723_s7 + $0x78] sm:$0xff]   ;;  %v1686_v12 = vld [vmem:[%s2724_s6 + $0x1] ss:$0 sm:$0xff] }
 0xfd2   :  { %v1208_v18 = vsel %vm455_vm5, %v1206_v35, %v2034_v16  ;;  %v1209_v38 = vsel %vm455_vm5, %v1207_v17, %v2035_v42 }
 0xfd3   :  { %v1210_v39 = vpack.c.bf16 %v1209_v38, %v1208_v18 }
 0xfd5   :  { %1911 = vmatmul.mubr.msk.bf16.vlgmr.msra.gmra.mrb[16].mxu1 %vm73_vm1, %v1210_v39 }
 0xfd6   :  { %1938 = vmatprep.mubr.msk.bf16.mxu1 %vm2155_vm0, %v2154_v0  ;;  %1923 = vmatpush3.bf16.msra.mxu1 %v2056_v34 }
 0xfd7   :  { %1924 = vmatprep.subr.bf16.mxu1 %v2154_v0 }
 0xfda   :  { %1925 = vmatpush3.bf16.msra.mxu1 %v2057_v41 }
 0xfdb   :  { %1926 = vmatprep.subr.bf16.mxu1 %v2154_v0 }
 0xfde   :  { %1927 = vmatpush3.bf16.msra.mxu1 %v2058_v1 }
 0xfdf   :  { %1928 = vmatprep.subr.bf16.mxu1 %v2154_v0 }
 0xfe2   :  { %1929 = vmatpush3.bf16.msra.mxu1 %v2059_v6 }
 0xfe3   :  { %1930 = vmatprep.subr.bf16.mxu1 %v2154_v0 }
 0xfe6   :  { %1931 = vmatpush3.bf16.msra.mxu1 %v2060_v27  ;;  %v1546_v27 = vrot.slane %v2611_v19, %v790_v9 }
 0xfe7   :  { %1932 = vmatprep.subr.bf16.mxu1 %v2154_v0 }
 0xfea   :  { %1933 = vmatpush3.bf16.msra.mxu1 %v2061_v7 }
 0xfeb   :  { %1934 = vmatprep.subr.bf16.mxu1 %v2154_v0 }
 0xfee   :  { %1935 = vmatpush3.bf16.msra.mxu1 %v2062_v8 }
 0xfef   :  { %1936 = vmatprep.subr.bf16.mxu1 %v2154_v0 }
 0xff2   :  { %1937 = vmatpush3.bf16.msra.mxu1 %v2063_v11  ;;  %v1552_v11 = vrot.slane %v2611_v19, %v796_v10 }
0x10a8   :  { %v1269_v14 = vpop.f32.mrb[16].mxu1 }
0x10a9   :  { %v1270_v22 = vadd.f32 %v1269_v14, %v1219_v28  ;;  %v1912_v43 = vpop.f32.mrb[17].mxu1 }
0x10aa   :  { %v1272_v23 = vpop.f32.mrb[18].mxu1 }
0x10ab   :  { %v1273_v51 = vadd.f32 %v1272_v23, %v1219_v28  ;;  %v1913_v49 = vpop.f32.mrb[19].mxu1  ;;  %v1276_v53 = vadd.f32 %v1270_v22, %v2492_v20 }
0x10ad   :  { %v1278_v57 = vsel %vm73_vm1, %v1276_v53, 0.0  ;;  %v1277_v24 = vadd.f32 %v1273_v51, %v2494_v21  ;;  %v2054_v21 = vld [vmem:[%s2722_s5 + $0x10] sm:$0xff]  }
0x10ae   :  { %1279 = vadd.xlane.f32.xlu0 %v1278_v57  ;;  %1915 = vmatpush3.bf16.msra.mxu0 %v2054_v21 }
0x10af   :  { %v1281_v3 = vsel %vm73_vm1, %v1277_v24, 0.0  ;;  %1916 = vmatprep.subr.bf16.mxu0 %v2154_v0 }
0x10b0   :  { %1282 = vadd.xlane.f32.xlu1 %v1281_v3 }
0x10b2   :  { %1917 = vmatpush3.bf16.msra.mxu0 %v2055_v37 }
0x10b3   :  { %1942 = vmatprep.subr.bf16.mxu0 %v2154_v0 }
0x113b   :  { %v1280_v58 = vpop.xlane.xlu0 %1279 }
0x113c   :  { %v1284_v4 = vmul.f32 0.03125, %v1280_v58 }
0x113d   :  { %v1283_v25 = vpop.xlane.xlu1 %1282 }
0x113e   :  { %v1286_v5 = vsub.f32 %v1276_v53, %v1284_v4  ;;  %v1285_v26 = vmul.f32 0.03125, %v1283_v25 }
0x1140   :  { %v1287_v31 = vsub.f32 %v1277_v24, %v1285_v26  ;;  %v1288_v32 = vmul.f32 %v1286_v5, %v1286_v5 }
0x1142   :  { %v1290_v33 = vsel %vm73_vm1, %v1288_v32, 0.0  ;;  %v1289_v36 = vmul.f32 %v1287_v31, %v1287_v31 }
0x1143   :  { %1291 = vadd.xlane.f32.xlu0 %v1290_v33 }
0x1144   :  { %v1293_v20 = vsel %vm73_vm1, %v1289_v36, 0.0 }
0x1147   :  { %1294 = vadd.xlane.f32.xlu0 %v1293_v20 }
0x11d0   :  { %v1292_v40 = vpop.xlane.xlu0 %1291 }
0x11d1   :  { %v1296_v30 = vmul.f32 0.03125, %v1292_v40 }
0x11d3   :  { %v1298_v44 = vadd.f32 1e-05, %v1296_v30 }
0x11d4   :  { %v1295_v45 = vpop.xlane.xlu0 %1294 }
0x11d5   :  { %2142 = vrsqrt.f32 %v1298_v44  ;;  %v1297_v46 = vmul.f32 0.03125, %v1295_v45 }
0x11d7   :  { %v1299_v47 = vadd.f32 1e-05, %v1297_v46 }
0x11d9   :  { %2144 = vrsqrt.f32 %v1299_v47 }
0x11df   :  { %v2143_v52 = vpop.eup %2142 }
0x11e0   :  { %v1302_v55 = vmul.f32 %v2143_v52, %v1286_v5 }
0x11e2   :  { %v1308_v59 = vmul.f32 %v1307_v54, %v1302_v55 }
0x11e3   :  { %v2145_v56 = vpop.eup %2144 }
0x11e4   :  { %v1303_v60 = vmul.f32 %v2145_v56, %v1287_v31  ;;  %v2636_v50 = vadd.f32 %v1313_v61, %v1308_v59  ;;  %v1425_v31 = vrot.slane %v2611_v19, %v669_v29 }
0x11e6   :  { %v1309_v48 = vmul.f32 %v1307_v54, %v1303_v60 }
0x11e8   :  { %v2638_v62 = vadd.f32 %v1313_v61, %v1309_v48  ;;  %v2064_v48 = vld [vmem:[%s2726_s9] sm:$0xff]  }
0x11ea   :  { %v1316_v63 = vpack.c.bf16 %v2638_v62, %v2636_v50 }
0x11ec   :  { %1919 = vmatmul.mubr.msk.bf16.vlgmr.msra.gmra.mrb[36].mxu0 %vm73_vm1, %v1316_v63 }
0x11ed   :  { %1946 = vmatprep.mubr.msk.bf16.mxu0 %vm2155_vm0, %v2154_v0  ;;  %1943 = vmatpush3.bf16.msra.mxu0 %v2064_v48 }
0x11ee   :  { %1944 = vmatprep.subr.bf16.mxu0 %v2154_v0 }
0x12bf   :  { %v1379_v13 = vpop.f32.mrb[36].mxu0 }
0x12c0   :  { %v1380_v15 = vadd.f32 %v1686_v12, %v1379_v13  ;;  %v1920_v42 = vpop.f32.mrb[37].mxu0 }
0x12c1   :  { %v1382_v16 = vpop.f32.mrb[38].mxu0 }
0x12c2   :  { %v1388_v35 = vmul.f32 0.044715, %v1380_v15  ;;  %v1383_v17 = vadd.f32 %v1686_v12, %v1382_v16  ;;  %v1921_v18 = vpop.f32.mrb[39].mxu0  ;;  %v1386_v3 = vmul.f32 0.5, %v1380_v15 }
0x12c4   :  { %v1390_v38 = vmul.f32 %v1388_v35, %v1380_v15  ;;  %v1389_v39 = vmul.f32 0.044715, %v1383_v17  ;;  %v1387_v58 = vmul.f32 0.5, %v1383_v17 }
0x12c6   :  { %v1392_v28 = vmul.f32 %v1390_v38, %v1380_v15  ;;  %v1391_v14 = vmul.f32 %v1389_v39, %v1383_v17 }
0x12c8   :  { %v1394_v22 = vadd.f32 %v1392_v28, %v1380_v15  ;;  %v1393_v43 = vmul.f32 %v1391_v14, %v1383_v17 }
0x12ca   :  { %v1396_v23 = vmul.f32 0.7978846, %v1394_v22  ;;  %v1395_v51 = vadd.f32 %v1393_v43, %v1383_v17 }
0x12cc   :  { %2146 = vtanh.f32 %v1396_v23  ;;  %v1397_v49 = vmul.f32 0.7978846, %v1395_v51 }
0x12ce   :  { %2148 = vtanh.f32 %v1397_v49 }
0x12d6   :  { %v2147_v53 = vpop.eup %2146 }
0x12d7   :  { %v1400_v57 = vadd.f32 1.0, %v2147_v53 }
0x12d8   :  { %v2149_v24 = vpop.eup %2148 }
0x12d9   :  { %v1401_v4 = vadd.f32 1.0, %v2149_v24  ;;  %v1402_v25 = vmul.f32 %v1400_v57, %v1386_v3 }
0x12db   :  { %v1403_v5 = vmul.f32 %v1401_v4, %v1387_v58 }
0x12dd   :  { %v1404_v26 = vpack.c.bf16 %v1403_v5, %v1402_v25 }
0x12df   :  { %1939 = vmatmul.mubr.bf16.vlgmr.msra.gmra.mrb[20].mxu1 %v1404_v26 }
0x13b2   :  { %v1508_v32 = vpop.f32.mrb[20].mxu1 }
0x13b3   :  { %v1509_v33 = vadd.f32 %v1508_v32, %v1425_v31  ;;  %v1940_v36 = vpop.f32.mrb[21].mxu1 }
0x13b4   :  { %v1511_v20 = vpop.f32.mrb[22].mxu1 }
0x13b5   :  { %v1512_v21 = vadd.f32 %v1511_v20, %v1425_v31  ;;  %v1941_v37 = vpop.f32.mrb[23].mxu1  ;;  %v1515_v40 = vadd.f32 %v1509_v33, %v2636_v50  ;;  %v2065_v50 = vld [vmem:[%s2726_s9 + $0x8] sm:$0xff]  }
0x13b6   :  { %1945 = vmatpush3.bf16.msra.mxu0 %v2065_v50 }
0x13b7   :  { %v1517_v30 = vsel %vm73_vm1, %v1515_v40, 0.0  ;;  %v1516_v44 = vadd.f32 %v1512_v21, %v2638_v62 }
0x13b8   :  { %1518 = vadd.xlane.f32.xlu1 %v1517_v30 }
0x13b9   :  { %v1520_v45 = vsel %vm73_vm1, %v1516_v44, 0.0 }
0x13ba   :  { %1521 = vadd.xlane.f32.xlu0 %v1520_v45 }
0x1445   :  { %v1519_v46 = vpop.xlane.xlu1 %1518 }
0x1446   :  { %v1523_v47 = vmul.f32 0.03125, %v1519_v46 }
0x1447   :  { %v1522_v52 = vpop.xlane.xlu0 %1521 }
0x1448   :  { %v1525_v29 = vsub.f32 %v1515_v40, %v1523_v47  ;;  %v1524_v54 = vmul.f32 0.03125, %v1522_v52 }
0x144a   :  { %v1526_v55 = vsub.f32 %v1516_v44, %v1524_v54  ;;  %v1527_v56 = vmul.f32 %v1525_v29, %v1525_v29 }
0x144c   :  { %v1529_v59 = vsel %vm73_vm1, %v1527_v56, 0.0  ;;  %v1528_v60 = vmul.f32 %v1526_v55, %v1526_v55 }
0x144d   :  { %1530 = vadd.xlane.f32.xlu1 %v1529_v59 }
0x144e   :  { %v1532_v61 = vsel %vm73_vm1, %v1528_v60, 0.0 }
0x144f   :  { %1533 = vadd.xlane.f32.xlu0 %v1532_v61 }
0x14da   :  { %v1531_v62 = vpop.xlane.xlu1 %1530 }
0x14db   :  { %v1535_v63 = vmul.f32 0.03125, %v1531_v62 }
0x14dc   :  { %v1534_v34 = vpop.xlane.xlu0 %1533 }
0x14dd   :  { %v1537_v41 = vadd.f32 1e-05, %v1535_v63  ;;  %v1536_v1 = vmul.f32 0.03125, %v1534_v34 }
0x14df   :  { %2150 = vrsqrt.f32 %v1537_v41  ;;  %v1538_v6 = vadd.f32 1e-05, %v1536_v1 }
0x14e1   :  { %2152 = vrsqrt.f32 %v1538_v6 }
0x14e9   :  { %v2151_v7 = vpop.eup %2150 }
0x14ea   :  { %v1541_v8 = vmul.f32 %v2151_v7, %v1525_v29 }
0x14eb   :  { %v2153_v0 = vpop.eup %2152 }
0x14ec   :  { %v1547_v12 = vmul.f32 %v1546_v27, %v1541_v8  ;;  %v1542_v13 = vmul.f32 %v2153_v0, %v1526_v55 }
0x14ee   :  { %v1548_v15 = vmul.f32 %v1546_v27, %v1542_v13  ;;  %v1553_v42 = vadd.f32 %v1552_v11, %v1547_v12 }
0x14f0   :  { %v1554_v16 = vadd.f32 %v1552_v11, %v1548_v15  ;;  %1714 = vst.msk [vmem:[%s2725_s10 + $0x10] sm:$0xff] %vm73_vm1, %v1553_v42 }
0x14f2   :  { %1715 = vst.msk [vmem:[%s2725_s10 + $0x18] sm:$0xff] %vm73_vm1, %v1554_v16  ;;  %v1558_v9 = vpack.c.bf16 %v1554_v16, %v1553_v42 }
0x14f4   :  { %1947 = vmatmul.mubr.msk.bf16.vlgmr.msra.gmra.mrb[40].mxu0 %vm73_vm1, %v1558_v9 }
0x15c7   :  { %v1612_v2 = vpop.f32.mrb[40].mxu0 }
0x15c8   :  { %1619 = vst [vmem:[%s2727_s11] sm:$0xff] %v1612_v2  ;;  %v1948_v10 = vpop.f32.mrb[41].mxu0 }
0x15c9   :  { %v1615_v19 = vpop.f32.mrb[42].mxu0 }
0x15ca   :  { %1620 = vst [vmem:[%s2727_s11 + $0x8] sm:$0xff] %v1615_v19  ;;  %v1949_v35 = vpop.f32.mrb[43].mxu0 }

</bundles_post_ra>
